<compile_context>
chip_gen: v5e
topology: v5e:2x2
jax: 0.10.0
libtpu: 0.0.40
codegen_flags: <defaults>
</compile_context>

<pallas_src>
import math
from functools import partial

import jax
import jax.numpy as jnp
from jax.experimental import pallas as pl
from jax.experimental.pallas import tpu as pltpu


# ------------------------------ tiling utils ------------------------------

def _round_up(v, m):
    return ((v + m - 1) // m) * m


def _tile_and_pad(dim, target):
    """Block size <= target that Mosaic accepts: either the full dim (always
    legal) or `target` (a multiple of 8/128) with the array padded up."""
    if dim <= target:
        return dim, dim
    return target, _round_up(dim, target)


# ----------------------------- Pallas kernels -----------------------------

def _linear_kernel(x_ref, w_ref, b_ref, o_ref, acc_ref, *, act):
    # x: [tm, tk] bf16, w: [tk, tn] bf16 (pre-transposed), b: [1, tn] f32.
    @pl.when(pl.program_id(2) == 0)
    def _():
        acc_ref[...] = jnp.zeros_like(acc_ref)

    acc_ref[...] += jnp.dot(x_ref[...], w_ref[...],
                            preferred_element_type=jnp.float32)

    @pl.when(pl.program_id(2) == pl.num_programs(2) - 1)
    def _():
        y = acc_ref[...] + b_ref[...]
        if act == "relu":
            y = jnp.maximum(y, 0.0)
        o_ref[...] = y.astype(o_ref.dtype)


def pallas_linear(x, w, b=None, act=None, out_dtype=jnp.float32,
                  tm_target=256, tk_target=512, tn_target=512):
    """y = act(x @ w + b).  x: [M, K], w: [K, N] (already transposed)."""
    M, K = x.shape
    Kw, N = w.shape
    assert Kw == K
    tm, Mp = _tile_and_pad(M, tm_target)
    tk, Kp = _tile_and_pad(K, tk_target)
    tn, Np = _tile_and_pad(N, tn_target)

    xb = x.astype(jnp.bfloat16)
    wb = w.astype(jnp.bfloat16)
    if (Mp, Kp) != (M, K):
        xb = jnp.pad(xb, ((0, Mp - M), (0, Kp - K)))
    if (Kp, Np) != (K, N):
        wb = jnp.pad(wb, ((0, Kp - K), (0, Np - N)))
    if b is None:
        bb = jnp.zeros((1, Np), jnp.float32)
    else:
        bb = b.astype(jnp.float32).reshape(1, N)
        if Np != N:
            bb = jnp.pad(bb, ((0, 0), (0, Np - N)))

    grid = (Mp // tm, Np // tn, Kp // tk)
    out = pl.pallas_call(
        partial(_linear_kernel, act=act),
        out_shape=jax.ShapeDtypeStruct((Mp, Np), out_dtype),
        grid_spec=pltpu.PrefetchScalarGridSpec(
            num_scalar_prefetch=0,
            grid=grid,
            in_specs=[pl.BlockSpec((tm, tk), lambda i, j, k: (i, k)),
                      pl.BlockSpec((tk, tn), lambda i, j, k: (k, j)),
                      pl.BlockSpec((1, tn), lambda i, j, k: (0, j))],
            out_specs=pl.BlockSpec((tm, tn), lambda i, j, k: (i, j)),
            scratch_shapes=[pltpu.VMEM((tm, tn), jnp.float32)]),
        compiler_params=pltpu.CompilerParams(
            dimension_semantics=("parallel", "parallel", "arbitrary")),
    )(xb, wb, bb)
    if (Mp, Np) != (M, N):
        out = out[:M, :N]
    return out


def _add_ln_kernel(x_ref, r_ref, g_ref, b_ref, o_ref, *, eps):
    # Fused residual-add + LayerNorm over the last dim (f32 math).
    x = x_ref[...].astype(jnp.float32) + r_ref[...].astype(jnp.float32)
    mean = jnp.mean(x, axis=-1, keepdims=True)
    xc = x - mean
    var = jnp.mean(xc * xc, axis=-1, keepdims=True)
    inv = jax.lax.rsqrt(var + eps)
    o_ref[...] = (xc * inv * g_ref[...] + b_ref[...]).astype(o_ref.dtype)


def pallas_add_layernorm(x, r, g, b, eps=1e-5, tm_target=256):
    M, D = x.shape
    tm, Mp = _tile_and_pad(M, tm_target)
    if Mp != M:
        x = jnp.pad(x, ((0, Mp - M), (0, 0)))
        r = jnp.pad(r, ((0, Mp - M), (0, 0)))
    out = pl.pallas_call(
        partial(_add_ln_kernel, eps=eps),
        out_shape=jax.ShapeDtypeStruct((Mp, D), jnp.float32),
        grid=(Mp // tm,),
        in_specs=[pl.BlockSpec((tm, D), lambda i: (i, 0)),
                  pl.BlockSpec((tm, D), lambda i: (i, 0)),
                  pl.BlockSpec((1, D), lambda i: (0, 0)),
                  pl.BlockSpec((1, D), lambda i: (0, 0))],
        out_specs=pl.BlockSpec((tm, D), lambda i: (i, 0)),
        compiler_params=pltpu.CompilerParams(
            dimension_semantics=("parallel",)),
    )(x, r, g.astype(jnp.float32).reshape(1, D),
      b.astype(jnp.float32).reshape(1, D))
    return out[:M] if Mp != M else out


def _self_attn_kernel(qkv_ref, cm_ref, kpm_ref, o_ref, *, num_heads, d_model):
    # qkv: [1, L, 3D] bf16 (fused projection), cm: [L, L], kpm: [1, 1, L].
    dh = d_model // num_heads
    qkv = qkv_ref[0]                                   # [L, 3D]
    mask = cm_ref[...] + kpm_ref[0]                    # [L, L] f32 (per batch)
    outs = []
    for h in range(num_heads):
        qh = qkv[:, h * dh:(h + 1) * dh]
        kh = qkv[:, d_model + h * dh:d_model + (h + 1) * dh]
        vh = qkv[:, 2 * d_model + h * dh:2 * d_model + (h + 1) * dh]
        s = jax.lax.dot_general(qh, kh, (((1,), (1,)), ((), ())),
                                preferred_element_type=jnp.float32)
        s = s + mask                                   # scale folded into Wq
        m = jnp.max(s, axis=-1, keepdims=True)
        p = jnp.exp(s - m)
        a = p * pl.reciprocal(jnp.sum(p, axis=-1, keepdims=True), approx=True)
        outs.append(jnp.dot(a.astype(vh.dtype), vh,
                            preferred_element_type=jnp.float32))
    o_ref[0] = jnp.concatenate(outs, axis=-1).astype(o_ref.dtype)


def pallas_self_attention(qkv, causal_mask, kpm, num_heads):
    B, L, D3 = qkv.shape
    D = D3 // 3
    return pl.pallas_call(
        partial(_self_attn_kernel, num_heads=num_heads, d_model=D),
        out_shape=jax.ShapeDtypeStruct((B, L, D), jnp.float32),
        grid=(B,),
        in_specs=[pl.BlockSpec((1, L, D3), lambda b: (b, 0, 0)),
                  pl.BlockSpec((L, L), lambda b: (0, 0)),
                  pl.BlockSpec((1, 1, L), lambda b: (b, 0, 0))],
        out_specs=pl.BlockSpec((1, L, D), lambda b: (b, 0, 0)),
        compiler_params=pltpu.CompilerParams(
            dimension_semantics=("parallel",)),
    )(qkv, causal_mask, kpm)


def _cross_attn_kernel(q_ref, kv_ref, o_ref, a_ref, *, num_heads, d_model):
    # q: [1, L, D] bf16, kv: [1, S, 2D] bf16 (fused K/V projection).
    dh = d_model // num_heads
    q = q_ref[0]                                       # [L, D]
    kv = kv_ref[0]                                     # [S, 2D]
    outs = []
    for h in range(num_heads):
        qh = q[:, h * dh:(h + 1) * dh]
        kh = kv[:, h * dh:(h + 1) * dh]
        vh = kv[:, d_model + h * dh:d_model + (h + 1) * dh]
        s = jax.lax.dot_general(qh, kh, (((1,), (1,)), ((), ())),
                                preferred_element_type=jnp.float32)
        m = jnp.max(s, axis=-1, keepdims=True)
        p = jnp.exp(s - m)
        a = p * pl.reciprocal(jnp.sum(p, axis=-1, keepdims=True), approx=True)
        a_ref[0, h] = a.astype(a_ref.dtype)
        outs.append(jnp.dot(a.astype(vh.dtype), vh,
                            preferred_element_type=jnp.float32))
    o_ref[0] = jnp.concatenate(outs, axis=-1).astype(o_ref.dtype)


def pallas_cross_attention(q, kv, num_heads):
    B, L, D = q.shape
    S = kv.shape[1]
    o, a = pl.pallas_call(
        partial(_cross_attn_kernel, num_heads=num_heads, d_model=D),
        out_shape=(jax.ShapeDtypeStruct((B, L, D), jnp.float32),
                   jax.ShapeDtypeStruct((B, num_heads, L, S), jnp.float32)),
        grid=(B,),
        in_specs=[pl.BlockSpec((1, L, D), lambda b: (b, 0, 0)),
                  pl.BlockSpec((1, S, 2 * D), lambda b: (b, 0, 0))],
        out_specs=(pl.BlockSpec((1, L, D), lambda b: (b, 0, 0)),
                   pl.BlockSpec((1, num_heads, L, S),
                                lambda b: (b, 0, 0, 0))),
        compiler_params=pltpu.CompilerParams(
            dimension_semantics=("parallel",)),
    )(q, kv)
    return o, a


# ---------------------------- model components ----------------------------

def decoder_layer(x, mem, causal_mask, kpm, p, *, num_heads):
    """Post-norm decoder layer: self-attn -> cross-attn (per-head weights)
    -> ReLU FFN.  x: [B, L, D] f32, mem: [B, S, D] f32."""
    B, L, D = x.shape
    S = mem.shape[1]
    x2 = x.reshape(B * L, D)

    # ---- masked self-attention (fused QKV, no weights output) ----
    qkv = pallas_linear(x2, p["sa_w_qkv"], p["sa_b_qkv"],
                        out_dtype=jnp.bfloat16).reshape(B, L, 3 * D)
    sa_o = pallas_self_attention(qkv, causal_mask, kpm, num_heads)
    sa_out = pallas_linear(sa_o.reshape(B * L, D), p["sa_w_out"], p["sa_b_out"])
    x2 = pallas_add_layernorm(x2, sa_out, p["self_norm_g"], p["self_norm_b"])

    # ---- cross-attention over encoded image (fused KV, per-head weights) --
    q = pallas_linear(x2, p["ca_w_q"], p["ca_b_q"],
                      out_dtype=jnp.bfloat16).reshape(B, L, D)
    kv = pallas_linear(mem.reshape(B * S, D), p["ca_w_kv"], p["ca_b_kv"],
                       out_dtype=jnp.bfloat16).reshape(B, S, 2 * D)
    ca_o, attns = pallas_cross_attention(q, kv, num_heads)
    ca_out = pallas_linear(ca_o.reshape(B * L, D), p["ca_w_out"], p["ca_b_out"])
    x2 = pallas_add_layernorm(x2, ca_out, p["cross_norm_g"], p["cross_norm_b"])

    # ---- feed-forward ----
    h = pallas_linear(x2, p["ff_w1"], p["ff_b1"], act="relu",
                      out_dtype=jnp.bfloat16)
    h = pallas_linear(h, p["ff_w2"], p["ff_b2"])
    x2 = pallas_add_layernorm(x2, h, p["ff_norm_g"], p["ff_norm_b"])
    return x2.reshape(B, L, D), attns


def positional_encoding(max_len, d_model):
    pos = jnp.arange(max_len, dtype=jnp.float32)[:, None]
    div = jnp.exp(jnp.arange(0, d_model, 2, dtype=jnp.float32)
                  * (-math.log(10000.0) / d_model))
    pe = jnp.zeros((max_len, d_model), jnp.float32)
    pe = pe.at[:, 0::2].set(jnp.sin(pos * div))
    pe = pe.at[:, 1::2].set(jnp.cos(pos * div))
    return pe


def decoder_forward(captions, mem, params, *, num_heads, pad_id):
    B, T = captions.shape
    # additive masks (large finite negative avoids NaN on fully-masked rows)
    kpm = jnp.where((captions == pad_id)[:, None, :], -1e30, 0.0)     # [B,1,T]
    kpm = kpm.astype(jnp.float32)
    causal = jnp.triu(jnp.full((T, T), -1e30, jnp.float32), k=1)      # [T,T]

    x = jnp.take(params["emb"], captions, axis=0)                     # [B,T,D]
    x = x + params["pe"][None, :T, :]                                 # dropout=id
    attns_all = []
    for lp in params["layers"]:
        x, attns = decoder_layer(x, mem, causal, kpm, lp, num_heads=num_heads)
        attns_all.append(attns)
    return x, jnp.stack(attns_all)


def transformer_forward(images, captions, params, *, num_heads, pad_id):
    # TODO(synk): pretrained timm ViT-L `forward_features` not reproducible
    # without its checkpoint; `images` is already the encoded feature map.
    tgt, attns = decoder_forward(captions, images, params,
                                 num_heads=num_heads, pad_id=pad_id)
    B, L, D = tgt.shape
    vocab = params["predictor_w"].shape[1]
    pred = pallas_linear(tgt.reshape(B * L, D), params["predictor_w"])  # no bias
    pred = pred.reshape(B, L, vocab)                                    # [B,L,V]
    return pred, attns


# ------------------------------- parameters -------------------------------

def init_params(key, vocab_size, d_model, ff_dim, n_layers, max_len, pad_id):
    """PyTorch-layout parameters ([N, K] Linear weights, fused in_proj)."""
    keys = jax.random.split(key, 2 + n_layers)

    def nrm(k, shape, scale=0.02):
        return scale * jax.random.normal(k, shape, jnp.float32)

    emb = nrm(keys[0], (vocab_size, d_model))
    emb = emb.at[pad_id].set(0.0)                      # padding_idx row = 0

    layers = []
    for li in range(n_layers):
        lk = jax.random.split(keys[2 + li], 6)
        layers.append({
            "self_attn": {
                "in_proj_weight": nrm(lk[0], (3 * d_model, d_model)),
                "in_proj_bias": jnp.zeros((3 * d_model,), jnp.float32),
                "out_proj_weight": nrm(lk[1], (d_model, d_model)),
                "out_proj_bias": jnp.zeros((d_model,), jnp.float32),
            },
            "cross_attn": {
                "in_proj_weight": nrm(lk[2], (3 * d_model, d_model)),
                "in_proj_bias": jnp.zeros((3 * d_model,), jnp.float32),
                "out_proj_weight": nrm(lk[3], (d_model, d_model)),
                "out_proj_bias": jnp.zeros((d_model,), jnp.float32),
            },
            "self_norm_g": jnp.ones((d_model,), jnp.float32),
            "self_norm_b": jnp.zeros((d_model,), jnp.float32),
            "cross_norm_g": jnp.ones((d_model,), jnp.float32),
            "cross_norm_b": jnp.zeros((d_model,), jnp.float32),
            "ff_w1": nrm(lk[4], (ff_dim, d_model)),
            "ff_b1": jnp.zeros((ff_dim,), jnp.float32),
            "ff_w2": nrm(lk[5], (d_model, ff_dim)),
            "ff_b2": jnp.zeros((d_model,), jnp.float32),
            "ff_norm_g": jnp.ones((d_model,), jnp.float32),
            "ff_norm_b": jnp.zeros((d_model,), jnp.float32),
        })

    predictor_w = nrm(keys[1], (vocab_size, d_model))
    return {"emb": emb, "layers": layers, "predictor_w": predictor_w,
            "pe": positional_encoding(max_len, d_model)}


def prepare_params(params, num_heads):
    """One-time (outside the forward) weight re-layout:
    - transpose all Linear weights to [K, N] and cast to bf16,
    - fold the 1/sqrt(Dh) attention scale into the q projection,
    - keep biases / layernorm params / embeddings in f32."""
    d_model = params["emb"].shape[1]
    scale = 1.0 / math.sqrt(d_model // num_heads)
    layers = []
    for p in params["layers"]:
        sa_w = p["self_attn"]["in_proj_weight"]        # [3D, D]
        sa_b = p["self_attn"]["in_proj_bias"]
        qscale = jnp.concatenate(
            [jnp.full((d_model,), scale, jnp.float32),
             jnp.ones((2 * d_model,), jnp.float32)])
        sa_w = sa_w * qscale[:, None]
        sa_b = sa_b * qscale
        ca_w = p["cross_attn"]["in_proj_weight"]
        ca_b = p["cross_attn"]["in_proj_bias"]
        layers.append({
            "sa_w_qkv": jnp.transpose(sa_w).astype(jnp.bfloat16),   # [D, 3D]
            "sa_b_qkv": sa_b,
            "sa_w_out": jnp.transpose(
                p["self_attn"]["out_proj_weight"]).astype(jnp.bfloat16),
            "sa_b_out": p["self_attn"]["out_proj_bias"],
            "ca_w_q": jnp.transpose(
                ca_w[:d_model] * scale).astype(jnp.bfloat16),       # [D, D]
            "ca_b_q": ca_b[:d_model] * scale,
            "ca_w_kv": jnp.transpose(ca_w[d_model:]).astype(jnp.bfloat16),  # [D,2D]
            "ca_b_kv": ca_b[d_model:],
            "ca_w_out": jnp.transpose(
                p["cross_attn"]["out_proj_weight"]).astype(jnp.bfloat16),
            "ca_b_out": p["cross_attn"]["out_proj_bias"],
            "self_norm_g": p["self_norm_g"], "self_norm_b": p["self_norm_b"],
            "cross_norm_g": p["cross_norm_g"], "cross_norm_b": p["cross_norm_b"],
            "ff_w1": jnp.transpose(p["ff_w1"]).astype(jnp.bfloat16),  # [D, FF]
            "ff_b1": p["ff_b1"],
            "ff_w2": jnp.transpose(p["ff_w2"]).astype(jnp.bfloat16),  # [FF, D]
            "ff_b2": p["ff_b2"],
            "ff_norm_g": p["ff_norm_g"], "ff_norm_b": p["ff_norm_b"],
        })
    return {"emb": params["emb"], "pe": params["pe"], "layers": layers,
            "predictor_w": jnp.transpose(
                params["predictor_w"]).astype(jnp.bfloat16)}          # [D, V]


# ---------------------------------- main -----------------------------------

if __name__ == "__main__":
    B, T = 2, 8                 # captions: [B, max_len-1]
    VOCAB, D, FF = 32, 64, 128
    N_LAYERS, N_HEADS = 2, 4
    MAX_LEN = T + 1
    S_IMG = 16                  # encode_size^2
    PAD_ID = 0

    key = jax.random.PRNGKey(0)
    k_img, k_cap, k_par = jax.random.split(key, 3)

    images = jax.random.normal(k_img, (B, S_IMG, D), jnp.float32)
    captions = jax.random.randint(k_cap, (B, T), 1, VOCAB, dtype=jnp.int32)
    captions = captions.at[1, -2:].set(PAD_ID)   # exercise key-padding mask

    params = init_params(k_par, VOCAB, D, FF, N_LAYERS, MAX_LEN, PAD_ID)
    kparams = prepare_params(params, N_HEADS)    # one-time weight re-layout

    fwd = jax.jit(partial(transformer_forward, num_heads=N_HEADS, pad_id=PAD_ID))
    preds, attns = fwd(images, captions, kparams)
    jax.block_until_ready((preds, attns))

    assert preds.shape == (B, T, VOCAB), preds.shape
    assert attns.shape == (N_LAYERS, B, N_HEADS, T, S_IMG), attns.shape
    assert bool(jnp.all(jnp.isfinite(preds))) and bool(jnp.all(jnp.isfinite(attns)))
    print("KERNEL_OK")
</pallas_src>

<mosaic_0001>
module attributes {stable_mosaic.version = 11 : i64} {
  func.func @_linear_kernel(%arg0: i32, %arg1: i32, %arg2: i32, %arg3: memref<16x64xbf16, #tpu.memory_space<vmem>>, %arg4: memref<64x192xbf16, #tpu.memory_space<vmem>>, %arg5: memref<1x192xf32, #tpu.memory_space<vmem>>, %arg6: memref<16x192xbf16, #tpu.memory_space<vmem>>, %arg7: memref<16x192xf32, #tpu.memory_space<vmem>>) attributes {dimension_semantics = [#tpu.dimension_semantics<parallel>, #tpu.dimension_semantics<parallel>, #tpu.dimension_semantics<arbitrary>], iteration_bounds = array<i64: 1, 1, 1>, scalar_prefetch = 0 : i64, scratch_operands = 1 : i64, tpu.core_type = #tpu.core_type<tc>, window_params = [{transform_indices = @transform_0, window_bounds = array<i64: 16, 64>}, {transform_indices = @transform_1, window_bounds = array<i64: 64, 192>}, {transform_indices = @transform_2, window_bounds = array<i64: 1, 192>}, {transform_indices = @transform_3, window_bounds = array<i64: 16, 192>}]} {
    %c0_i32 = arith.constant 0 : i32
    %0 = arith.cmpi eq, %arg2, %c0_i32 : i32
    %1 = arith.extui %0 : i1 to i32
    %c0_i32_0 = arith.constant 0 : i32
    %2 = arith.cmpi ne, %1, %c0_i32_0 : i32
    scf.if %2 {
      %cst_10 = arith.constant 0.000000e+00 : f32
      %12 = vector.broadcast %cst_10 : f32 to vector<16x192xf32>
      %c0_11 = arith.constant 0 : index
      %c0_12 = arith.constant 0 : index
      %13 = vector.load %arg7[%c0_11, %c0_12] : memref<16x192xf32, #tpu.memory_space<vmem>>, vector<16x192xf32>
      tpu.vector_store %arg7[%c0_11, %c0_12], %12 {strides = array<i32>} : memref<16x192xf32, #tpu.memory_space<vmem>>, vector<16x192xf32>,
    } else {
    }
    %c0 = arith.constant 0 : index
    %c0_1 = arith.constant 0 : index
    %3 = vector.load %arg7[%c0, %c0_1] : memref<16x192xf32, #tpu.memory_space<vmem>>, vector<16x192xf32>
    %c0_2 = arith.constant 0 : index
    %c0_3 = arith.constant 0 : index
    %4 = vector.load %arg3[%c0_2, %c0_3] : memref<16x64xbf16, #tpu.memory_space<vmem>>, vector<16x64xbf16>
    %c0_4 = arith.constant 0 : index
    %c0_5 = arith.constant 0 : index
    %5 = vector.load %arg4[%c0_4, %c0_5] : memref<64x192xbf16, #tpu.memory_space<vmem>>, vector<64x192xbf16>
    %cst = arith.constant dense<0.000000e+00> : vector<16x192xf32>
    %6 = tpu.matmul %4, %5, %cst {dimension_numbers = #tpu.dot_dimension_numbers<[1], [0], [0], [1], [0, 0, 1, 1], [], []>} : vector<16x64xbf16>, vector<64x192xbf16>, vector<16x192xf32> -> vector<16x192xf32>
    %7 = arith.addf %3, %6 : vector<16x192xf32>
    %c0_6 = arith.constant 0 : index
    %c0_7 = arith.constant 0 : index
    %8 = vector.load %arg7[%c0_6, %c0_7] : memref<16x192xf32, #tpu.memory_space<vmem>>, vector<16x192xf32>
    tpu.vector_store %arg7[%c0_6, %c0_7], %7 {strides = array<i32>} : memref<16x192xf32, #tpu.memory_space<vmem>>, vector<16x192xf32>,
    %c0_i32_8 = arith.constant 0 : i32
    %9 = arith.cmpi eq, %arg2, %c0_i32_8 : i32
    %10 = arith.extui %9 : i1 to i32
    %c0_i32_9 = arith.constant 0 : i32
    %11 = arith.cmpi ne, %10, %c0_i32_9 : i32
    scf.if %11 {
      %c0_10 = arith.constant 0 : index
      %c0_11 = arith.constant 0 : index
      %12 = vector.load %arg7[%c0_10, %c0_11] : memref<16x192xf32, #tpu.memory_space<vmem>>, vector<16x192xf32>
      %c0_12 = arith.constant 0 : index
      %c0_13 = arith.constant 0 : index
      %13 = vector.load %arg5[%c0_12, %c0_13] : memref<1x192xf32, #tpu.memory_space<vmem>>, vector<1x192xf32>
      %14 = vector.broadcast %13 : vector<1x192xf32> to vector<16x192xf32>
      %15 = arith.addf %12, %14 : vector<16x192xf32>
      %16 = arith.truncf %15 : vector<16x192xf32> to vector<16x192xbf16>
      %c0_14 = arith.constant 0 : index
      %c0_15 = arith.constant 0 : index
      %17 = vector.load %arg6[%c0_14, %c0_15] : memref<16x192xbf16, #tpu.memory_space<vmem>>, vector<16x192xbf16>
      tpu.vector_store %arg6[%c0_14, %c0_15], %16 {strides = array<i32>} : memref<16x192xbf16, #tpu.memory_space<vmem>>, vector<16x192xbf16>,
    } else {
    }
    return
  }
  func.func @transform_0(%arg0: i32, %arg1: i32, %arg2: i32) -> (i32, i32) {
    %c0_i32 = arith.constant 0 : i32
    return %arg0, %arg2 : i32, i32
  }
  func.func @transform_1(%arg0: i32, %arg1: i32, %arg2: i32) -> (i32, i32) {
    %c0_i32 = arith.constant 0 : i32
    return %arg2, %arg1 : i32, i32
  }
  func.func @transform_2(%arg0: i32, %arg1: i32, %arg2: i32) -> (i32, i32) {
    %c0_i32 = arith.constant 0 : i32
    %c0_i32_0 = arith.constant 0 : i32
    return %c0_i32, %arg1 : i32, i32
  }
  func.func @transform_3(%arg0: i32, %arg1: i32, %arg2: i32) -> (i32, i32) {
    %c0_i32 = arith.constant 0 : i32
    return %arg0, %arg1 : i32, i32
  }
}

module attributes {stable_mosaic.version = 11 : i64} {
  func.func @_linear_kernel(%arg0: i32, %arg1: i32, %arg2: i32, %arg3: memref<16x64xbf16, #tpu.memory_space<vmem>>, %arg4: memref<64x64xbf16, #tpu.memory_space<vmem>>, %arg5: memref<1x64xf32, #tpu.memory_space<vmem>>, %arg6: memref<16x64xf32, #tpu.memory_space<vmem>>, %arg7: memref<16x64xf32, #tpu.memory_space<vmem>>) attributes {dimension_semantics = [#tpu.dimension_semantics<parallel>, #tpu.dimension_semantics<parallel>, #tpu.dimension_semantics<arbitrary>], iteration_bounds = array<i64: 1, 1, 1>, scalar_prefetch = 0 : i64, scratch_operands = 1 : i64, tpu.core_type = #tpu.core_type<tc>, window_params = [{transform_indices = @transform_0, window_bounds = array<i64: 16, 64>}, {transform_indices = @transform_1, window_bounds = array<i64: 64, 64>}, {transform_indices = @transform_2, window_bounds = array<i64: 1, 64>}, {transform_indices = @transform_3, window_bounds = array<i64: 16, 64>}]} {
    %c0_i32 = arith.constant 0 : i32
    %0 = arith.cmpi eq, %arg2, %c0_i32 : i32
    %1 = arith.extui %0 : i1 to i32
    %c0_i32_0 = arith.constant 0 : i32
    %2 = arith.cmpi ne, %1, %c0_i32_0 : i32
    scf.if %2 {
      %cst_10 = arith.constant 0.000000e+00 : f32
      %12 = vector.broadcast %cst_10 : f32 to vector<16x64xf32>
      %c0_11 = arith.constant 0 : index
      %c0_12 = arith.constant 0 : index
      %13 = vector.load %arg7[%c0_11, %c0_12] : memref<16x64xf32, #tpu.memory_space<vmem>>, vector<16x64xf32>
      tpu.vector_store %arg7[%c0_11, %c0_12], %12 {strides = array<i32>} : memref<16x64xf32, #tpu.memory_space<vmem>>, vector<16x64xf32>,
    } else {
    }
    %c0 = arith.constant 0 : index
    %c0_1 = arith.constant 0 : index
    %3 = vector.load %arg7[%c0, %c0_1] : memref<16x64xf32, #tpu.memory_space<vmem>>, vector<16x64xf32>
    %c0_2 = arith.constant 0 : index
    %c0_3 = arith.constant 0 : index
    %4 = vector.load %arg3[%c0_2, %c0_3] : memref<16x64xbf16, #tpu.memory_space<vmem>>, vector<16x64xbf16>
    %c0_4 = arith.constant 0 : index
    %c0_5 = arith.constant 0 : index
    %5 = vector.load %arg4[%c0_4, %c0_5] : memref<64x64xbf16, #tpu.memory_space<vmem>>, vector<64x64xbf16>
    %cst = arith.constant dense<0.000000e+00> : vector<16x64xf32>
    %6 = tpu.matmul %4, %5, %cst {dimension_numbers = #tpu.dot_dimension_numbers<[1], [0], [0], [1], [0, 0, 1, 1], [], []>} : vector<16x64xbf16>, vector<64x64xbf16>, vector<16x64xf32> -> vector<16x64xf32>
    %7 = arith.addf %3, %6 : vector<16x64xf32>
    %c0_6 = arith.constant 0 : index
    %c0_7 = arith.constant 0 : index
    %8 = vector.load %arg7[%c0_6, %c0_7] : memref<16x64xf32, #tpu.memory_space<vmem>>, vector<16x64xf32>
    tpu.vector_store %arg7[%c0_6, %c0_7], %7 {strides = array<i32>} : memref<16x64xf32, #tpu.memory_space<vmem>>, vector<16x64xf32>,
    %c0_i32_8 = arith.constant 0 : i32
    %9 = arith.cmpi eq, %arg2, %c0_i32_8 : i32
    %10 = arith.extui %9 : i1 to i32
    %c0_i32_9 = arith.constant 0 : i32
    %11 = arith.cmpi ne, %10, %c0_i32_9 : i32
    scf.if %11 {
      %c0_10 = arith.constant 0 : index
      %c0_11 = arith.constant 0 : index
      %12 = vector.load %arg7[%c0_10, %c0_11] : memref<16x64xf32, #tpu.memory_space<vmem>>, vector<16x64xf32>
      %c0_12 = arith.constant 0 : index
      %c0_13 = arith.constant 0 : index
      %13 = vector.load %arg5[%c0_12, %c0_13] : memref<1x64xf32, #tpu.memory_space<vmem>>, vector<1x64xf32>
      %14 = vector.broadcast %13 : vector<1x64xf32> to vector<16x64xf32>
      %15 = arith.addf %12, %14 : vector<16x64xf32>
      %c0_14 = arith.constant 0 : index
      %c0_15 = arith.constant 0 : index
      %16 = vector.load %arg6[%c0_14, %c0_15] : memref<16x64xf32, #tpu.memory_space<vmem>>, vector<16x64xf32>
      tpu.vector_store %arg6[%c0_14, %c0_15], %15 {strides = array<i32>} : memref<16x64xf32, #tpu.memory_space<vmem>>, vector<16x64xf32>,
    } else {
    }
    return
  }
  func.func @transform_0(%arg0: i32, %arg1: i32, %arg2: i32) -> (i32, i32) {
    %c0_i32 = arith.constant 0 : i32
    return %arg0, %arg2 : i32, i32
  }
  func.func @transform_1(%arg0: i32, %arg1: i32, %arg2: i32) -> (i32, i32) {
    %c0_i32 = arith.constant 0 : i32
    return %arg2, %arg1 : i32, i32
  }
  func.func @transform_2(%arg0: i32, %arg1: i32, %arg2: i32) -> (i32, i32) {
    %c0_i32 = arith.constant 0 : i32
    %c0_i32_0 = arith.constant 0 : i32
    return %c0_i32, %arg1 : i32, i32
  }
  func.func @transform_3(%arg0: i32, %arg1: i32, %arg2: i32) -> (i32, i32) {
    %c0_i32 = arith.constant 0 : i32
    return %arg0, %arg1 : i32, i32
  }
}

module attributes {stable_mosaic.version = 11 : i64} {
  func.func @_add_ln_kernel(%arg0: i32, %arg1: memref<16x64xf32, #tpu.memory_space<vmem>>, %arg2: memref<16x64xf32, #tpu.memory_space<vmem>>, %arg3: memref<1x64xf32, #tpu.memory_space<vmem>>, %arg4: memref<1x64xf32, #tpu.memory_space<vmem>>, %arg5: memref<16x64xf32, #tpu.memory_space<vmem>>) attributes {dimension_semantics = [#tpu.dimension_semantics<parallel>], iteration_bounds = array<i64: 1>, scalar_prefetch = 0 : i64, scratch_operands = 0 : i64, tpu.core_type = #tpu.core_type<tc>, window_params = [{transform_indices = @transform_0, window_bounds = array<i64: 16, 64>}, {transform_indices = @transform_1, window_bounds = array<i64: 16, 64>}, {pipeline_mode = #tpu.pipeline_mode<synchronous>, transform_indices = @transform_2, window_bounds = array<i64: 1, 64>}, {pipeline_mode = #tpu.pipeline_mode<synchronous>, transform_indices = @transform_3, window_bounds = array<i64: 1, 64>}, {transform_indices = @transform_4, window_bounds = array<i64: 16, 64>}]} {
    %c0 = arith.constant 0 : index
    %c0_0 = arith.constant 0 : index
    %0 = vector.load %arg1[%c0, %c0_0] : memref<16x64xf32, #tpu.memory_space<vmem>>, vector<16x64xf32>
    %c0_1 = arith.constant 0 : index
    %c0_2 = arith.constant 0 : index
    %1 = vector.load %arg2[%c0_1, %c0_2] : memref<16x64xf32, #tpu.memory_space<vmem>>, vector<16x64xf32>
    %2 = arith.addf %0, %1 : vector<16x64xf32>
    %cst = arith.constant dense<0.000000e+00> : vector<16xf32>
    %3 = vector.multi_reduction <add>, %2, %cst [1] : vector<16x64xf32> to vector<16xf32>
    %4 = vector.shape_cast %3 : vector<16xf32> to vector<16x1xf32>
    %cst_3 = arith.constant 6.400000e+01 : f32
    %5 = vector.broadcast %cst_3 : f32 to vector<16x1xf32>
    %6 = arith.divf %4, %5 : vector<16x1xf32>
    %7 = vector.broadcast %6 : vector<16x1xf32> to vector<16x64xf32>
    %8 = arith.subf %2, %7 : vector<16x64xf32>
    %9 = arith.mulf %8, %8 : vector<16x64xf32>
    %cst_4 = arith.constant dense<0.000000e+00> : vector<16xf32>
    %10 = vector.multi_reduction <add>, %9, %cst_4 [1] : vector<16x64xf32> to vector<16xf32>
    %11 = vector.shape_cast %10 : vector<16xf32> to vector<16x1xf32>
    %cst_5 = arith.constant 6.400000e+01 : f32
    %12 = vector.broadcast %cst_5 : f32 to vector<16x1xf32>
    %13 = arith.divf %11, %12 : vector<16x1xf32>
    %cst_6 = arith.constant 9.99999974E-6 : f32
    %14 = vector.broadcast %cst_6 : f32 to vector<16x1xf32>
    %15 = arith.addf %13, %14 : vector<16x1xf32>
    %16 = math.rsqrt %15 : vector<16x1xf32>
    %17 = vector.broadcast %16 : vector<16x1xf32> to vector<16x64xf32>
    %18 = arith.mulf %8, %17 : vector<16x64xf32>
    %c0_7 = arith.constant 0 : index
    %c0_8 = arith.constant 0 : index
    %19 = vector.load %arg3[%c0_7, %c0_8] : memref<1x64xf32, #tpu.memory_space<vmem>>, vector<1x64xf32>
    %20 = vector.broadcast %19 : vector<1x64xf32> to vector<16x64xf32>
    %21 = arith.mulf %18, %20 : vector<16x64xf32>
    %c0_9 = arith.constant 0 : index
    %c0_10 = arith.constant 0 : index
    %22 = vector.load %arg4[%c0_9, %c0_10] : memref<1x64xf32, #tpu.memory_space<vmem>>, vector<1x64xf32>
    %23 = vector.broadcast %22 : vector<1x64xf32> to vector<16x64xf32>
    %24 = arith.addf %21, %23 : vector<16x64xf32>
    %c0_11 = arith.constant 0 : index
    %c0_12 = arith.constant 0 : index
    %25 = vector.load %arg5[%c0_11, %c0_12] : memref<16x64xf32, #tpu.memory_space<vmem>>, vector<16x64xf32>
    tpu.vector_store %arg5[%c0_11, %c0_12], %24 {strides = array<i32>} : memref<16x64xf32, #tpu.memory_space<vmem>>, vector<16x64xf32>,
    return
  }
  func.func @transform_0(%arg0: i32) -> (i32, i32) {
    %c0_i32 = arith.constant 0 : i32
    %c0_i32_0 = arith.constant 0 : i32
    return %arg0, %c0_i32 : i32, i32
  }
  func.func @transform_1(%arg0: i32) -> (i32, i32) {
    %c0_i32 = arith.constant 0 : i32
    %c0_i32_0 = arith.constant 0 : i32
    return %arg0, %c0_i32 : i32, i32
  }
  func.func @transform_2(%arg0: i32) -> (i32, i32) {
    %c0_i32 = arith.constant 0 : i32
    %c0_i32_0 = arith.constant 0 : i32
    %c0_i32_1 = arith.constant 0 : i32
    return %c0_i32, %c0_i32_0 : i32, i32
  }
  func.func @transform_3(%arg0: i32) -> (i32, i32) {
    %c0_i32 = arith.constant 0 : i32
    %c0_i32_0 = arith.constant 0 : i32
    %c0_i32_1 = arith.constant 0 : i32
    return %c0_i32, %c0_i32_0 : i32, i32
  }
  func.func @transform_4(%arg0: i32) -> (i32, i32) {
    %c0_i32 = arith.constant 0 : i32
    %c0_i32_0 = arith.constant 0 : i32
    return %arg0, %c0_i32 : i32, i32
  }
}

module attributes {stable_mosaic.version = 11 : i64} {
  func.func @_self_attn_kernel(%arg0: i32, %arg1: memref<1x8x192xbf16, #tpu.memory_space<vmem>>, %arg2: memref<8x8xf32, #tpu.memory_space<vmem>>, %arg3: memref<1x1x8xf32, #tpu.memory_space<vmem>>, %arg4: memref<1x8x64xf32, #tpu.memory_space<vmem>>) attributes {dimension_semantics = [#tpu.dimension_semantics<parallel>], iteration_bounds = array<i64: 2>, scalar_prefetch = 0 : i64, scratch_operands = 0 : i64, tpu.core_type = #tpu.core_type<tc>, window_params = [{transform_indices = @transform_0, window_bounds = array<i64: 1, 8, 192>}, {pipeline_mode = #tpu.pipeline_mode<synchronous>, transform_indices = @transform_1, window_bounds = array<i64: 8, 8>}, {transform_indices = @transform_2, window_bounds = array<i64: 1, 1, 8>}, {transform_indices = @transform_3, window_bounds = array<i64: 1, 8, 64>}]} {
    %c0 = arith.constant 0 : index
    %c0_0 = arith.constant 0 : index
    %c0_1 = arith.constant 0 : index
    %0 = vector.load %arg1[%c0, %c0_0, %c0_1] : memref<1x8x192xbf16, #tpu.memory_space<vmem>>, vector<1x8x192xbf16>
    %1 = vector.shape_cast %0 : vector<1x8x192xbf16> to vector<8x192xbf16>
    %c0_2 = arith.constant 0 : index
    %c0_3 = arith.constant 0 : index
    %2 = vector.load %arg2[%c0_2, %c0_3] : memref<8x8xf32, #tpu.memory_space<vmem>>, vector<8x8xf32>
    %c0_4 = arith.constant 0 : index
    %c0_5 = arith.constant 0 : index
    %c0_6 = arith.constant 0 : index
    %3 = vector.load %arg3[%c0_4, %c0_5, %c0_6] : memref<1x1x8xf32, #tpu.memory_space<vmem>>, vector<1x1x8xf32>
    %4 = vector.shape_cast %3 : vector<1x1x8xf32> to vector<1x8xf32>
    %5 = vector.broadcast %4 : vector<1x8xf32> to vector<8x8xf32>
    %6 = arith.addf %2, %5 : vector<8x8xf32>
    %7 = vector.extract_strided_slice %1 {offsets = [0, 0], sizes = [8, 16], strides = [1, 1]} : vector<8x192xbf16> to vector<8x16xbf16>
    %8 = vector.extract_strided_slice %1 {offsets = [0, 64], sizes = [8, 16], strides = [1, 1]} : vector<8x192xbf16> to vector<8x16xbf16>
    %9 = vector.extract_strided_slice %1 {offsets = [0, 128], sizes = [8, 16], strides = [1, 1]} : vector<8x192xbf16> to vector<8x16xbf16>
    %cst = arith.constant dense<0.000000e+00> : vector<8x8xf32>
    %10 = tpu.matmul %7, %8, %cst {dimension_numbers = #tpu.dot_dimension_numbers<[1], [1], [0], [0], [0, 0, 1, 0], [], []>} : vector<8x16xbf16>, vector<8x16xbf16>, vector<8x8xf32> -> vector<8x8xf32>
    %11 = arith.addf %10, %6 : vector<8x8xf32>
    %cst_7 = arith.constant dense<0xFF800000> : vector<8xf32>
    %12 = vector.multi_reduction <maximumf>, %11, %cst_7 [1] : vector<8x8xf32> to vector<8xf32>
    %13 = vector.shape_cast %12 : vector<8xf32> to vector<8x1xf32>
    %14 = vector.broadcast %13 : vector<8x1xf32> to vector<8x8xf32>
    %15 = arith.subf %11, %14 : vector<8x8xf32>
    %16 = math.exp %15 : vector<8x8xf32>
    %cst_8 = arith.constant dense<0.000000e+00> : vector<8xf32>
    %17 = vector.multi_reduction <add>, %16, %cst_8 [1] : vector<8x8xf32> to vector<8xf32>
    %18 = vector.shape_cast %17 : vector<8xf32> to vector<8x1xf32>
    %19 = tpu.reciprocal %18 {approx = true} : vector<8x1xf32> -> vector<8x1xf32>
    %20 = vector.broadcast %19 : vector<8x1xf32> to vector<8x8xf32>
    %21 = arith.mulf %16, %20 : vector<8x8xf32>
    %22 = arith.truncf %21 : vector<8x8xf32> to vector<8x8xbf16>
    %cst_9 = arith.constant dense<0.000000e+00> : vector<8x16xf32>
    %23 = tpu.matmul %22, %9, %cst_9 {dimension_numbers = #tpu.dot_dimension_numbers<[1], [0], [0], [1], [0, 0, 1, 1], [], []>} : vector<8x8xbf16>, vector<8x16xbf16>, vector<8x16xf32> -> vector<8x16xf32>
    %24 = vector.extract_strided_slice %1 {offsets = [0, 16], sizes = [8, 16], strides = [1, 1]} : vector<8x192xbf16> to vector<8x16xbf16>
    %25 = vector.extract_strided_slice %1 {offsets = [0, 80], sizes = [8, 16], strides = [1, 1]} : vector<8x192xbf16> to vector<8x16xbf16>
    %26 = vector.extract_strided_slice %1 {offsets = [0, 144], sizes = [8, 16], strides = [1, 1]} : vector<8x192xbf16> to vector<8x16xbf16>
    %cst_10 = arith.constant dense<0.000000e+00> : vector<8x8xf32>
    %27 = tpu.matmul %24, %25, %cst_10 {dimension_numbers = #tpu.dot_dimension_numbers<[1], [1], [0], [0], [0, 0, 1, 0], [], []>} : vector<8x16xbf16>, vector<8x16xbf16>, vector<8x8xf32> -> vector<8x8xf32>
    %28 = arith.addf %27, %6 : vector<8x8xf32>
    %cst_11 = arith.constant dense<0xFF800000> : vector<8xf32>
    %29 = vector.multi_reduction <maximumf>, %28, %cst_11 [1] : vector<8x8xf32> to vector<8xf32>
    %30 = vector.shape_cast %29 : vector<8xf32> to vector<8x1xf32>
    %31 = vector.broadcast %30 : vector<8x1xf32> to vector<8x8xf32>
    %32 = arith.subf %28, %31 : vector<8x8xf32>
    %33 = math.exp %32 : vector<8x8xf32>
    %cst_12 = arith.constant dense<0.000000e+00> : vector<8xf32>
    %34 = vector.multi_reduction <add>, %33, %cst_12 [1] : vector<8x8xf32> to vector<8xf32>
    %35 = vector.shape_cast %34 : vector<8xf32> to vector<8x1xf32>
    %36 = tpu.reciprocal %35 {approx = true} : vector<8x1xf32> -> vector<8x1xf32>
    %37 = vector.broadcast %36 : vector<8x1xf32> to vector<8x8xf32>
    %38 = arith.mulf %33, %37 : vector<8x8xf32>
    %39 = arith.truncf %38 : vector<8x8xf32> to vector<8x8xbf16>
    %cst_13 = arith.constant dense<0.000000e+00> : vector<8x16xf32>
    %40 = tpu.matmul %39, %26, %cst_13 {dimension_numbers = #tpu.dot_dimension_numbers<[1], [0], [0], [1], [0, 0, 1, 1], [], []>} : vector<8x8xbf16>, vector<8x16xbf16>, vector<8x16xf32> -> vector<8x16xf32>
    %41 = vector.extract_strided_slice %1 {offsets = [0, 32], sizes = [8, 16], strides = [1, 1]} : vector<8x192xbf16> to vector<8x16xbf16>
    %42 = vector.extract_strided_slice %1 {offsets = [0, 96], sizes = [8, 16], strides = [1, 1]} : vector<8x192xbf16> to vector<8x16xbf16>
    %43 = vector.extract_strided_slice %1 {offsets = [0, 160], sizes = [8, 16], strides = [1, 1]} : vector<8x192xbf16> to vector<8x16xbf16>
    %cst_14 = arith.constant dense<0.000000e+00> : vector<8x8xf32>
    %44 = tpu.matmul %41, %42, %cst_14 {dimension_numbers = #tpu.dot_dimension_numbers<[1], [1], [0], [0], [0, 0, 1, 0], [], []>} : vector<8x16xbf16>, vector<8x16xbf16>, vector<8x8xf32> -> vector<8x8xf32>
    %45 = arith.addf %44, %6 : vector<8x8xf32>
    %cst_15 = arith.constant dense<0xFF800000> : vector<8xf32>
    %46 = vector.multi_reduction <maximumf>, %45, %cst_15 [1] : vector<8x8xf32> to vector<8xf32>
    %47 = vector.shape_cast %46 : vector<8xf32> to vector<8x1xf32>
    %48 = vector.broadcast %47 : vector<8x1xf32> to vector<8x8xf32>
    %49 = arith.subf %45, %48 : vector<8x8xf32>
    %50 = math.exp %49 : vector<8x8xf32>
    %cst_16 = arith.constant dense<0.000000e+00> : vector<8xf32>
    %51 = vector.multi_reduction <add>, %50, %cst_16 [1] : vector<8x8xf32> to vector<8xf32>
    %52 = vector.shape_cast %51 : vector<8xf32> to vector<8x1xf32>
    %53 = tpu.reciprocal %52 {approx = true} : vector<8x1xf32> -> vector<8x1xf32>
    %54 = vector.broadcast %53 : vector<8x1xf32> to vector<8x8xf32>
    %55 = arith.mulf %50, %54 : vector<8x8xf32>
    %56 = arith.truncf %55 : vector<8x8xf32> to vector<8x8xbf16>
    %cst_17 = arith.constant dense<0.000000e+00> : vector<8x16xf32>
    %57 = tpu.matmul %56, %43, %cst_17 {dimension_numbers = #tpu.dot_dimension_numbers<[1], [0], [0], [1], [0, 0, 1, 1], [], []>} : vector<8x8xbf16>, vector<8x16xbf16>, vector<8x16xf32> -> vector<8x16xf32>
    %58 = vector.extract_strided_slice %1 {offsets = [0, 48], sizes = [8, 16], strides = [1, 1]} : vector<8x192xbf16> to vector<8x16xbf16>
    %59 = vector.extract_strided_slice %1 {offsets = [0, 112], sizes = [8, 16], strides = [1, 1]} : vector<8x192xbf16> to vector<8x16xbf16>
    %60 = vector.extract_strided_slice %1 {offsets = [0, 176], sizes = [8, 16], strides = [1, 1]} : vector<8x192xbf16> to vector<8x16xbf16>
    %cst_18 = arith.constant dense<0.000000e+00> : vector<8x8xf32>
    %61 = tpu.matmul %58, %59, %cst_18 {dimension_numbers = #tpu.dot_dimension_numbers<[1], [1], [0], [0], [0, 0, 1, 0], [], []>} : vector<8x16xbf16>, vector<8x16xbf16>, vector<8x8xf32> -> vector<8x8xf32>
    %62 = arith.addf %61, %6 : vector<8x8xf32>
    %cst_19 = arith.constant dense<0xFF800000> : vector<8xf32>
    %63 = vector.multi_reduction <maximumf>, %62, %cst_19 [1] : vector<8x8xf32> to vector<8xf32>
    %64 = vector.shape_cast %63 : vector<8xf32> to vector<8x1xf32>
    %65 = vector.broadcast %64 : vector<8x1xf32> to vector<8x8xf32>
    %66 = arith.subf %62, %65 : vector<8x8xf32>
    %67 = math.exp %66 : vector<8x8xf32>
    %cst_20 = arith.constant dense<0.000000e+00> : vector<8xf32>
    %68 = vector.multi_reduction <add>, %67, %cst_20 [1] : vector<8x8xf32> to vector<8xf32>
    %69 = vector.shape_cast %68 : vector<8xf32> to vector<8x1xf32>
    %70 = tpu.reciprocal %69 {approx = true} : vector<8x1xf32> -> vector<8x1xf32>
    %71 = vector.broadcast %70 : vector<8x1xf32> to vector<8x8xf32>
    %72 = arith.mulf %67, %71 : vector<8x8xf32>
    %73 = arith.truncf %72 : vector<8x8xf32> to vector<8x8xbf16>
    %cst_21 = arith.constant dense<0.000000e+00> : vector<8x16xf32>
    %74 = tpu.matmul %73, %60, %cst_21 {dimension_numbers = #tpu.dot_dimension_numbers<[1], [0], [0], [1], [0, 0, 1, 1], [], []>} : vector<8x8xbf16>, vector<8x16xbf16>, vector<8x16xf32> -> vector<8x16xf32>
    %75 = tpu.concatenate %23, %40, %57, %74 in 1 : vector<8x16xf32>, vector<8x16xf32>, vector<8x16xf32>, vector<8x16xf32> -> vector<8x64xf32>
    %c0_22 = arith.constant 0 : index
    %c0_23 = arith.constant 0 : index
    %c0_24 = arith.constant 0 : index
    %76 = vector.load %arg4[%c0_22, %c0_23, %c0_24] : memref<1x8x64xf32, #tpu.memory_space<vmem>>, vector<1x8x64xf32>
    %77 = vector.shape_cast %76 : vector<1x8x64xf32> to vector<8x64xf32>
    %78 = vector.shape_cast %75 : vector<8x64xf32> to vector<1x8x64xf32>
    tpu.vector_store %arg4[%c0_22, %c0_23, %c0_24], %78 {strides = array<i32>} : memref<1x8x64xf32, #tpu.memory_space<vmem>>, vector<1x8x64xf32>,
    return
  }
  func.func @transform_0(%arg0: i32) -> (i32, i32, i32) {
    %c0_i32 = arith.constant 0 : i32
    %c0_i32_0 = arith.constant 0 : i32
    %c0_i32_1 = arith.constant 0 : i32
    return %arg0, %c0_i32, %c0_i32_0 : i32, i32, i32
  }
  func.func @transform_1(%arg0: i32) -> (i32, i32) {
    %c0_i32 = arith.constant 0 : i32
    %c0_i32_0 = arith.constant 0 : i32
    %c0_i32_1 = arith.constant 0 : i32
    return %c0_i32, %c0_i32_0 : i32, i32
  }
  func.func @transform_2(%arg0: i32) -> (i32, i32, i32) {
    %c0_i32 = arith.constant 0 : i32
    %c0_i32_0 = arith.constant 0 : i32
    %c0_i32_1 = arith.constant 0 : i32
    return %arg0, %c0_i32, %c0_i32_0 : i32, i32, i32
  }
  func.func @transform_3(%arg0: i32) -> (i32, i32, i32) {
    %c0_i32 = arith.constant 0 : i32
    %c0_i32_0 = arith.constant 0 : i32
    %c0_i32_1 = arith.constant 0 : i32
    return %arg0, %c0_i32, %c0_i32_0 : i32, i32, i32
  }
}

module attributes {stable_mosaic.version = 11 : i64} {
  func.func @_linear_kernel(%arg0: i32, %arg1: i32, %arg2: i32, %arg3: memref<32x64xbf16, #tpu.memory_space<vmem>>, %arg4: memref<64x128xbf16, #tpu.memory_space<vmem>>, %arg5: memref<1x128xf32, #tpu.memory_space<vmem>>, %arg6: memref<32x128xbf16, #tpu.memory_space<vmem>>, %arg7: memref<32x128xf32, #tpu.memory_space<vmem>>) attributes {dimension_semantics = [#tpu.dimension_semantics<parallel>, #tpu.dimension_semantics<parallel>, #tpu.dimension_semantics<arbitrary>], iteration_bounds = array<i64: 1, 1, 1>, scalar_prefetch = 0 : i64, scratch_operands = 1 : i64, tpu.core_type = #tpu.core_type<tc>, window_params = [{transform_indices = @transform_0, window_bounds = array<i64: 32, 64>}, {transform_indices = @transform_1, window_bounds = array<i64: 64, 128>}, {transform_indices = @transform_2, window_bounds = array<i64: 1, 128>}, {transform_indices = @transform_3, window_bounds = array<i64: 32, 128>}]} {
    %c0_i32 = arith.constant 0 : i32
    %0 = arith.cmpi eq, %arg2, %c0_i32 : i32
    %1 = arith.extui %0 : i1 to i32
    %c0_i32_0 = arith.constant 0 : i32
    %2 = arith.cmpi ne, %1, %c0_i32_0 : i32
    scf.if %2 {
      %cst_10 = arith.constant 0.000000e+00 : f32
      %12 = vector.broadcast %cst_10 : f32 to vector<32x128xf32>
      %c0_11 = arith.constant 0 : index
      %c0_12 = arith.constant 0 : index
      %13 = vector.load %arg7[%c0_11, %c0_12] : memref<32x128xf32, #tpu.memory_space<vmem>>, vector<32x128xf32>
      tpu.vector_store %arg7[%c0_11, %c0_12], %12 {strides = array<i32>} : memref<32x128xf32, #tpu.memory_space<vmem>>, vector<32x128xf32>,
    } else {
    }
    %c0 = arith.constant 0 : index
    %c0_1 = arith.constant 0 : index
    %3 = vector.load %arg7[%c0, %c0_1] : memref<32x128xf32, #tpu.memory_space<vmem>>, vector<32x128xf32>
    %c0_2 = arith.constant 0 : index
    %c0_3 = arith.constant 0 : index
    %4 = vector.load %arg3[%c0_2, %c0_3] : memref<32x64xbf16, #tpu.memory_space<vmem>>, vector<32x64xbf16>
    %c0_4 = arith.constant 0 : index
    %c0_5 = arith.constant 0 : index
    %5 = vector.load %arg4[%c0_4, %c0_5] : memref<64x128xbf16, #tpu.memory_space<vmem>>, vector<64x128xbf16>
    %cst = arith.constant dense<0.000000e+00> : vector<32x128xf32>
    %6 = tpu.matmul %4, %5, %cst {dimension_numbers = #tpu.dot_dimension_numbers<[1], [0], [0], [1], [0, 0, 1, 1], [], []>} : vector<32x64xbf16>, vector<64x128xbf16>, vector<32x128xf32> -> vector<32x128xf32>
    %7 = arith.addf %3, %6 : vector<32x128xf32>
    %c0_6 = arith.constant 0 : index
    %c0_7 = arith.constant 0 : index
    %8 = vector.load %arg7[%c0_6, %c0_7] : memref<32x128xf32, #tpu.memory_space<vmem>>, vector<32x128xf32>
    tpu.vector_store %arg7[%c0_6, %c0_7], %7 {strides = array<i32>} : memref<32x128xf32, #tpu.memory_space<vmem>>, vector<32x128xf32>,
    %c0_i32_8 = arith.constant 0 : i32
    %9 = arith.cmpi eq, %arg2, %c0_i32_8 : i32
    %10 = arith.extui %9 : i1 to i32
    %c0_i32_9 = arith.constant 0 : i32
    %11 = arith.cmpi ne, %10, %c0_i32_9 : i32
    scf.if %11 {
      %c0_10 = arith.constant 0 : index
      %c0_11 = arith.constant 0 : index
      %12 = vector.load %arg7[%c0_10, %c0_11] : memref<32x128xf32, #tpu.memory_space<vmem>>, vector<32x128xf32>
      %c0_12 = arith.constant 0 : index
      %c0_13 = arith.constant 0 : index
      %13 = vector.load %arg5[%c0_12, %c0_13] : memref<1x128xf32, #tpu.memory_space<vmem>>, vector<1x128xf32>
      %14 = vector.broadcast %13 : vector<1x128xf32> to vector<32x128xf32>
      %15 = arith.addf %12, %14 : vector<32x128xf32>
      %16 = arith.truncf %15 : vector<32x128xf32> to vector<32x128xbf16>
      %c0_14 = arith.constant 0 : index
      %c0_15 = arith.constant 0 : index
      %17 = vector.load %arg6[%c0_14, %c0_15] : memref<32x128xbf16, #tpu.memory_space<vmem>>, vector<32x128xbf16>
      tpu.vector_store %arg6[%c0_14, %c0_15], %16 {strides = array<i32>} : memref<32x128xbf16, #tpu.memory_space<vmem>>, vector<32x128xbf16>,
    } else {
    }
    return
  }
  func.func @transform_0(%arg0: i32, %arg1: i32, %arg2: i32) -> (i32, i32) {
    %c0_i32 = arith.constant 0 : i32
    return %arg0, %arg2 : i32, i32
  }
  func.func @transform_1(%arg0: i32, %arg1: i32, %arg2: i32) -> (i32, i32) {
    %c0_i32 = arith.constant 0 : i32
    return %arg2, %arg1 : i32, i32
  }
  func.func @transform_2(%arg0: i32, %arg1: i32, %arg2: i32) -> (i32, i32) {
    %c0_i32 = arith.constant 0 : i32
    %c0_i32_0 = arith.constant 0 : i32
    return %c0_i32, %arg1 : i32, i32
  }
  func.func @transform_3(%arg0: i32, %arg1: i32, %arg2: i32) -> (i32, i32) {
    %c0_i32 = arith.constant 0 : i32
    return %arg0, %arg1 : i32, i32
  }
}

module attributes {stable_mosaic.version = 11 : i64} {
  func.func @_linear_kernel(%arg0: i32, %arg1: i32, %arg2: i32, %arg3: memref<16x64xbf16, #tpu.memory_space<vmem>>, %arg4: memref<64x128xbf16, #tpu.memory_space<vmem>>, %arg5: memref<1x128xf32, #tpu.memory_space<vmem>>, %arg6: memref<16x128xbf16, #tpu.memory_space<vmem>>, %arg7: memref<16x128xf32, #tpu.memory_space<vmem>>) attributes {dimension_semantics = [#tpu.dimension_semantics<parallel>, #tpu.dimension_semantics<parallel>, #tpu.dimension_semantics<arbitrary>], iteration_bounds = array<i64: 1, 1, 1>, scalar_prefetch = 0 : i64, scratch_operands = 1 : i64, tpu.core_type = #tpu.core_type<tc>, window_params = [{transform_indices = @transform_0, window_bounds = array<i64: 16, 64>}, {transform_indices = @transform_1, window_bounds = array<i64: 64, 128>}, {transform_indices = @transform_2, window_bounds = array<i64: 1, 128>}, {transform_indices = @transform_3, window_bounds = array<i64: 16, 128>}]} {
    %c0_i32 = arith.constant 0 : i32
    %0 = arith.cmpi eq, %arg2, %c0_i32 : i32
    %1 = arith.extui %0 : i1 to i32
    %c0_i32_0 = arith.constant 0 : i32
    %2 = arith.cmpi ne, %1, %c0_i32_0 : i32
    scf.if %2 {
      %cst_10 = arith.constant 0.000000e+00 : f32
      %12 = vector.broadcast %cst_10 : f32 to vector<16x128xf32>
      %c0_11 = arith.constant 0 : index
      %c0_12 = arith.constant 0 : index
      %13 = vector.load %arg7[%c0_11, %c0_12] : memref<16x128xf32, #tpu.memory_space<vmem>>, vector<16x128xf32>
      tpu.vector_store %arg7[%c0_11, %c0_12], %12 {strides = array<i32>} : memref<16x128xf32, #tpu.memory_space<vmem>>, vector<16x128xf32>,
    } else {
    }
    %c0 = arith.constant 0 : index
    %c0_1 = arith.constant 0 : index
    %3 = vector.load %arg7[%c0, %c0_1] : memref<16x128xf32, #tpu.memory_space<vmem>>, vector<16x128xf32>
    %c0_2 = arith.constant 0 : index
    %c0_3 = arith.constant 0 : index
    %4 = vector.load %arg3[%c0_2, %c0_3] : memref<16x64xbf16, #tpu.memory_space<vmem>>, vector<16x64xbf16>
    %c0_4 = arith.constant 0 : index
    %c0_5 = arith.constant 0 : index
    %5 = vector.load %arg4[%c0_4, %c0_5] : memref<64x128xbf16, #tpu.memory_space<vmem>>, vector<64x128xbf16>
    %cst = arith.constant dense<0.000000e+00> : vector<16x128xf32>
    %6 = tpu.matmul %4, %5, %cst {dimension_numbers = #tpu.dot_dimension_numbers<[1], [0], [0], [1], [0, 0, 1, 1], [], []>} : vector<16x64xbf16>, vector<64x128xbf16>, vector<16x128xf32> -> vector<16x128xf32>
    %7 = arith.addf %3, %6 : vector<16x128xf32>
    %c0_6 = arith.constant 0 : index
    %c0_7 = arith.constant 0 : index
    %8 = vector.load %arg7[%c0_6, %c0_7] : memref<16x128xf32, #tpu.memory_space<vmem>>, vector<16x128xf32>
    tpu.vector_store %arg7[%c0_6, %c0_7], %7 {strides = array<i32>} : memref<16x128xf32, #tpu.memory_space<vmem>>, vector<16x128xf32>,
    %c0_i32_8 = arith.constant 0 : i32
    %9 = arith.cmpi eq, %arg2, %c0_i32_8 : i32
    %10 = arith.extui %9 : i1 to i32
    %c0_i32_9 = arith.constant 0 : i32
    %11 = arith.cmpi ne, %10, %c0_i32_9 : i32
    scf.if %11 {
      %c0_10 = arith.constant 0 : index
      %c0_11 = arith.constant 0 : index
      %12 = vector.load %arg7[%c0_10, %c0_11] : memref<16x128xf32, #tpu.memory_space<vmem>>, vector<16x128xf32>
      %c0_12 = arith.constant 0 : index
      %c0_13 = arith.constant 0 : index
      %13 = vector.load %arg5[%c0_12, %c0_13] : memref<1x128xf32, #tpu.memory_space<vmem>>, vector<1x128xf32>
      %14 = vector.broadcast %13 : vector<1x128xf32> to vector<16x128xf32>
      %15 = arith.addf %12, %14 : vector<16x128xf32>
      %cst_14 = arith.constant 0.000000e+00 : f32
      %16 = vector.broadcast %cst_14 : f32 to vector<16x128xf32>
      %17 = arith.maximumf %15, %16 : vector<16x128xf32>
      %18 = arith.truncf %17 : vector<16x128xf32> to vector<16x128xbf16>
      %c0_15 = arith.constant 0 : index
      %c0_16 = arith.constant 0 : index
      %19 = vector.load %arg6[%c0_15, %c0_16] : memref<16x128xbf16, #tpu.memory_space<vmem>>, vector<16x128xbf16>
      tpu.vector_store %arg6[%c0_15, %c0_16], %18 {strides = array<i32>} : memref<16x128xbf16, #tpu.memory_space<vmem>>, vector<16x128xbf16>,
    } else {
    }
    return
  }
  func.func @transform_0(%arg0: i32, %arg1: i32, %arg2: i32) -> (i32, i32) {
    %c0_i32 = arith.constant 0 : i32
    return %arg0, %arg2 : i32, i32
  }
  func.func @transform_1(%arg0: i32, %arg1: i32, %arg2: i32) -> (i32, i32) {
    %c0_i32 = arith.constant 0 : i32
    return %arg2, %arg1 : i32, i32
  }
  func.func @transform_2(%arg0: i32, %arg1: i32, %arg2: i32) -> (i32, i32) {
    %c0_i32 = arith.constant 0 : i32
    %c0_i32_0 = arith.constant 0 : i32
    return %c0_i32, %arg1 : i32, i32
  }
  func.func @transform_3(%arg0: i32, %arg1: i32, %arg2: i32) -> (i32, i32) {
    %c0_i32 = arith.constant 0 : i32
    return %arg0, %arg1 : i32, i32
  }
}

module attributes {stable_mosaic.version = 11 : i64} {
  func.func @_cross_attn_kernel(%arg0: i32, %arg1: memref<1x8x64xbf16, #tpu.memory_space<vmem>>, %arg2: memref<1x16x128xbf16, #tpu.memory_space<vmem>>, %arg3: memref<1x8x64xf32, #tpu.memory_space<vmem>>, %arg4: memref<1x4x8x16xf32, #tpu.memory_space<vmem>>) attributes {dimension_semantics = [#tpu.dimension_semantics<parallel>], iteration_bounds = array<i64: 2>, scalar_prefetch = 0 : i64, scratch_operands = 0 : i64, tpu.core_type = #tpu.core_type<tc>, window_params = [{transform_indices = @transform_0, window_bounds = array<i64: 1, 8, 64>}, {transform_indices = @transform_1, window_bounds = array<i64: 1, 16, 128>}, {transform_indices = @transform_2, window_bounds = array<i64: 1, 8, 64>}, {transform_indices = @transform_3, window_bounds = array<i64: 1, 4, 8, 16>}]} {
    %c0 = arith.constant 0 : index
    %c0_0 = arith.constant 0 : index
    %c0_1 = arith.constant 0 : index
    %0 = vector.load %arg1[%c0, %c0_0, %c0_1] : memref<1x8x64xbf16, #tpu.memory_space<vmem>>, vector<1x8x64xbf16>
    %1 = vector.shape_cast %0 : vector<1x8x64xbf16> to vector<8x64xbf16>
    %c0_2 = arith.constant 0 : index
    %c0_3 = arith.constant 0 : index
    %c0_4 = arith.constant 0 : index
    %2 = vector.load %arg2[%c0_2, %c0_3, %c0_4] : memref<1x16x128xbf16, #tpu.memory_space<vmem>>, vector<1x16x128xbf16>
    %3 = vector.shape_cast %2 : vector<1x16x128xbf16> to vector<16x128xbf16>
    %4 = vector.extract_strided_slice %1 {offsets = [0, 0], sizes = [8, 16], strides = [1, 1]} : vector<8x64xbf16> to vector<8x16xbf16>
    %5 = vector.extract_strided_slice %3 {offsets = [0, 0], sizes = [16, 16], strides = [1, 1]} : vector<16x128xbf16> to vector<16x16xbf16>
    %6 = vector.extract_strided_slice %3 {offsets = [0, 64], sizes = [16, 16], strides = [1, 1]} : vector<16x128xbf16> to vector<16x16xbf16>
    %cst = arith.constant dense<0.000000e+00> : vector<8x16xf32>
    %7 = tpu.matmul %4, %5, %cst {dimension_numbers = #tpu.dot_dimension_numbers<[1], [1], [0], [0], [0, 0, 1, 0], [], []>} : vector<8x16xbf16>, vector<16x16xbf16>, vector<8x16xf32> -> vector<8x16xf32>
    %cst_5 = arith.constant dense<0xFF800000> : vector<8xf32>
    %8 = vector.multi_reduction <maximumf>, %7, %cst_5 [1] : vector<8x16xf32> to vector<8xf32>
    %9 = vector.shape_cast %8 : vector<8xf32> to vector<8x1xf32>
    %10 = vector.broadcast %9 : vector<8x1xf32> to vector<8x16xf32>
    %11 = arith.subf %7, %10 : vector<8x16xf32>
    %12 = math.exp %11 : vector<8x16xf32>
    %cst_6 = arith.constant dense<0.000000e+00> : vector<8xf32>
    %13 = vector.multi_reduction <add>, %12, %cst_6 [1] : vector<8x16xf32> to vector<8xf32>
    %14 = vector.shape_cast %13 : vector<8xf32> to vector<8x1xf32>
    %15 = tpu.reciprocal %14 {approx = true} : vector<8x1xf32> -> vector<8x1xf32>
    %16 = vector.broadcast %15 : vector<8x1xf32> to vector<8x16xf32>
    %17 = arith.mulf %12, %16 : vector<8x16xf32>
    %c0_7 = arith.constant 0 : index
    %c0_8 = arith.constant 0 : index
    %c0_9 = arith.constant 0 : index
    %c0_10 = arith.constant 0 : index
    %18 = vector.load %arg4[%c0_7, %c0_8, %c0_9, %c0_10] : memref<1x4x8x16xf32, #tpu.memory_space<vmem>>, vector<1x1x8x16xf32>
    %19 = vector.shape_cast %18 : vector<1x1x8x16xf32> to vector<8x16xf32>
    %20 = vector.shape_cast %17 : vector<8x16xf32> to vector<1x1x8x16xf32>
    tpu.vector_store %arg4[%c0_7, %c0_8, %c0_9, %c0_10], %20 {strides = array<i32>} : memref<1x4x8x16xf32, #tpu.memory_space<vmem>>, vector<1x1x8x16xf32>,
    %21 = arith.truncf %17 : vector<8x16xf32> to vector<8x16xbf16>
    %cst_11 = arith.constant dense<0.000000e+00> : vector<8x16xf32>
    %22 = tpu.matmul %21, %6, %cst_11 {dimension_numbers = #tpu.dot_dimension_numbers<[1], [0], [0], [1], [0, 0, 1, 1], [], []>} : vector<8x16xbf16>, vector<16x16xbf16>, vector<8x16xf32> -> vector<8x16xf32>
    %23 = vector.extract_strided_slice %1 {offsets = [0, 16], sizes = [8, 16], strides = [1, 1]} : vector<8x64xbf16> to vector<8x16xbf16>
    %24 = vector.extract_strided_slice %3 {offsets = [0, 16], sizes = [16, 16], strides = [1, 1]} : vector<16x128xbf16> to vector<16x16xbf16>
    %25 = vector.extract_strided_slice %3 {offsets = [0, 80], sizes = [16, 16], strides = [1, 1]} : vector<16x128xbf16> to vector<16x16xbf16>
    %cst_12 = arith.constant dense<0.000000e+00> : vector<8x16xf32>
    %26 = tpu.matmul %23, %24, %cst_12 {dimension_numbers = #tpu.dot_dimension_numbers<[1], [1], [0], [0], [0, 0, 1, 0], [], []>} : vector<8x16xbf16>, vector<16x16xbf16>, vector<8x16xf32> -> vector<8x16xf32>
    %cst_13 = arith.constant dense<0xFF800000> : vector<8xf32>
    %27 = vector.multi_reduction <maximumf>, %26, %cst_13 [1] : vector<8x16xf32> to vector<8xf32>
    %28 = vector.shape_cast %27 : vector<8xf32> to vector<8x1xf32>
    %29 = vector.broadcast %28 : vector<8x1xf32> to vector<8x16xf32>
    %30 = arith.subf %26, %29 : vector<8x16xf32>
    %31 = math.exp %30 : vector<8x16xf32>
    %cst_14 = arith.constant dense<0.000000e+00> : vector<8xf32>
    %32 = vector.multi_reduction <add>, %31, %cst_14 [1] : vector<8x16xf32> to vector<8xf32>
    %33 = vector.shape_cast %32 : vector<8xf32> to vector<8x1xf32>
    %34 = tpu.reciprocal %33 {approx = true} : vector<8x1xf32> -> vector<8x1xf32>
    %35 = vector.broadcast %34 : vector<8x1xf32> to vector<8x16xf32>
    %36 = arith.mulf %31, %35 : vector<8x16xf32>
    %c0_15 = arith.constant 0 : index
    %c1 = arith.constant 1 : index
    %c0_16 = arith.constant 0 : index
    %c0_17 = arith.constant 0 : index
    %37 = vector.load %arg4[%c0_15, %c1, %c0_16, %c0_17] : memref<1x4x8x16xf32, #tpu.memory_space<vmem>>, vector<1x1x8x16xf32>
    %38 = vector.shape_cast %37 : vector<1x1x8x16xf32> to vector<8x16xf32>
    %39 = vector.shape_cast %36 : vector<8x16xf32> to vector<1x1x8x16xf32>
    tpu.vector_store %arg4[%c0_15, %c1, %c0_16, %c0_17], %39 {strides = array<i32>} : memref<1x4x8x16xf32, #tpu.memory_space<vmem>>, vector<1x1x8x16xf32>,
    %40 = arith.truncf %36 : vector<8x16xf32> to vector<8x16xbf16>
    %cst_18 = arith.constant dense<0.000000e+00> : vector<8x16xf32>
    %41 = tpu.matmul %40, %25, %cst_18 {dimension_numbers = #tpu.dot_dimension_numbers<[1], [0], [0], [1], [0, 0, 1, 1], [], []>} : vector<8x16xbf16>, vector<16x16xbf16>, vector<8x16xf32> -> vector<8x16xf32>
    %42 = vector.extract_strided_slice %1 {offsets = [0, 32], sizes = [8, 16], strides = [1, 1]} : vector<8x64xbf16> to vector<8x16xbf16>
    %43 = vector.extract_strided_slice %3 {offsets = [0, 32], sizes = [16, 16], strides = [1, 1]} : vector<16x128xbf16> to vector<16x16xbf16>
    %44 = vector.extract_strided_slice %3 {offsets = [0, 96], sizes = [16, 16], strides = [1, 1]} : vector<16x128xbf16> to vector<16x16xbf16>
    %cst_19 = arith.constant dense<0.000000e+00> : vector<8x16xf32>
    %45 = tpu.matmul %42, %43, %cst_19 {dimension_numbers = #tpu.dot_dimension_numbers<[1], [1], [0], [0], [0, 0, 1, 0], [], []>} : vector<8x16xbf16>, vector<16x16xbf16>, vector<8x16xf32> -> vector<8x16xf32>
    %cst_20 = arith.constant dense<0xFF800000> : vector<8xf32>
    %46 = vector.multi_reduction <maximumf>, %45, %cst_20 [1] : vector<8x16xf32> to vector<8xf32>
    %47 = vector.shape_cast %46 : vector<8xf32> to vector<8x1xf32>
    %48 = vector.broadcast %47 : vector<8x1xf32> to vector<8x16xf32>
    %49 = arith.subf %45, %48 : vector<8x16xf32>
    %50 = math.exp %49 : vector<8x16xf32>
    %cst_21 = arith.constant dense<0.000000e+00> : vector<8xf32>
    %51 = vector.multi_reduction <add>, %50, %cst_21 [1] : vector<8x16xf32> to vector<8xf32>
    %52 = vector.shape_cast %51 : vector<8xf32> to vector<8x1xf32>
    %53 = tpu.reciprocal %52 {approx = true} : vector<8x1xf32> -> vector<8x1xf32>
    %54 = vector.broadcast %53 : vector<8x1xf32> to vector<8x16xf32>
    %55 = arith.mulf %50, %54 : vector<8x16xf32>
    %c0_22 = arith.constant 0 : index
    %c2 = arith.constant 2 : index
    %c0_23 = arith.constant 0 : index
    %c0_24 = arith.constant 0 : index
    %56 = vector.load %arg4[%c0_22, %c2, %c0_23, %c0_24] : memref<1x4x8x16xf32, #tpu.memory_space<vmem>>, vector<1x1x8x16xf32>
    %57 = vector.shape_cast %56 : vector<1x1x8x16xf32> to vector<8x16xf32>
    %58 = vector.shape_cast %55 : vector<8x16xf32> to vector<1x1x8x16xf32>
    tpu.vector_store %arg4[%c0_22, %c2, %c0_23, %c0_24], %58 {strides = array<i32>} : memref<1x4x8x16xf32, #tpu.memory_space<vmem>>, vector<1x1x8x16xf32>,
    %59 = arith.truncf %55 : vector<8x16xf32> to vector<8x16xbf16>
    %cst_25 = arith.constant dense<0.000000e+00> : vector<8x16xf32>
    %60 = tpu.matmul %59, %44, %cst_25 {dimension_numbers = #tpu.dot_dimension_numbers<[1], [0], [0], [1], [0, 0, 1, 1], [], []>} : vector<8x16xbf16>, vector<16x16xbf16>, vector<8x16xf32> -> vector<8x16xf32>
    %61 = vector.extract_strided_slice %1 {offsets = [0, 48], sizes = [8, 16], strides = [1, 1]} : vector<8x64xbf16> to vector<8x16xbf16>
    %62 = vector.extract_strided_slice %3 {offsets = [0, 48], sizes = [16, 16], strides = [1, 1]} : vector<16x128xbf16> to vector<16x16xbf16>
    %63 = vector.extract_strided_slice %3 {offsets = [0, 112], sizes = [16, 16], strides = [1, 1]} : vector<16x128xbf16> to vector<16x16xbf16>
    %cst_26 = arith.constant dense<0.000000e+00> : vector<8x16xf32>
    %64 = tpu.matmul %61, %62, %cst_26 {dimension_numbers = #tpu.dot_dimension_numbers<[1], [1], [0], [0], [0, 0, 1, 0], [], []>} : vector<8x16xbf16>, vector<16x16xbf16>, vector<8x16xf32> -> vector<8x16xf32>
    %cst_27 = arith.constant dense<0xFF800000> : vector<8xf32>
    %65 = vector.multi_reduction <maximumf>, %64, %cst_27 [1] : vector<8x16xf32> to vector<8xf32>
    %66 = vector.shape_cast %65 : vector<8xf32> to vector<8x1xf32>
    %67 = vector.broadcast %66 : vector<8x1xf32> to vector<8x16xf32>
    %68 = arith.subf %64, %67 : vector<8x16xf32>
    %69 = math.exp %68 : vector<8x16xf32>
    %cst_28 = arith.constant dense<0.000000e+00> : vector<8xf32>
    %70 = vector.multi_reduction <add>, %69, %cst_28 [1] : vector<8x16xf32> to vector<8xf32>
    %71 = vector.shape_cast %70 : vector<8xf32> to vector<8x1xf32>
    %72 = tpu.reciprocal %71 {approx = true} : vector<8x1xf32> -> vector<8x1xf32>
    %73 = vector.broadcast %72 : vector<8x1xf32> to vector<8x16xf32>
    %74 = arith.mulf %69, %73 : vector<8x16xf32>
    %c0_29 = arith.constant 0 : index
    %c3 = arith.constant 3 : index
    %c0_30 = arith.constant 0 : index
    %c0_31 = arith.constant 0 : index
    %75 = vector.load %arg4[%c0_29, %c3, %c0_30, %c0_31] : memref<1x4x8x16xf32, #tpu.memory_space<vmem>>, vector<1x1x8x16xf32>
    %76 = vector.shape_cast %75 : vector<1x1x8x16xf32> to vector<8x16xf32>
    %77 = vector.shape_cast %74 : vector<8x16xf32> to vector<1x1x8x16xf32>
    tpu.vector_store %arg4[%c0_29, %c3, %c0_30, %c0_31], %77 {strides = array<i32>} : memref<1x4x8x16xf32, #tpu.memory_space<vmem>>, vector<1x1x8x16xf32>,
    %78 = arith.truncf %74 : vector<8x16xf32> to vector<8x16xbf16>
    %cst_32 = arith.constant dense<0.000000e+00> : vector<8x16xf32>
    %79 = tpu.matmul %78, %63, %cst_32 {dimension_numbers = #tpu.dot_dimension_numbers<[1], [0], [0], [1], [0, 0, 1, 1], [], []>} : vector<8x16xbf16>, vector<16x16xbf16>, vector<8x16xf32> -> vector<8x16xf32>
    %80 = tpu.concatenate %22, %41, %60, %79 in 1 : vector<8x16xf32>, vector<8x16xf32>, vector<8x16xf32>, vector<8x16xf32> -> vector<8x64xf32>
    %c0_33 = arith.constant 0 : index
    %c0_34 = arith.constant 0 : index
    %c0_35 = arith.constant 0 : index
    %81 = vector.load %arg3[%c0_33, %c0_34, %c0_35] : memref<1x8x64xf32, #tpu.memory_space<vmem>>, vector<1x8x64xf32>
    %82 = vector.shape_cast %81 : vector<1x8x64xf32> to vector<8x64xf32>
    %83 = vector.shape_cast %80 : vector<8x64xf32> to vector<1x8x64xf32>
    tpu.vector_store %arg3[%c0_33, %c0_34, %c0_35], %83 {strides = array<i32>} : memref<1x8x64xf32, #tpu.memory_space<vmem>>, vector<1x8x64xf32>,
    return
  }
  func.func @transform_0(%arg0: i32) -> (i32, i32, i32) {
    %c0_i32 = arith.constant 0 : i32
    %c0_i32_0 = arith.constant 0 : i32
    %c0_i32_1 = arith.constant 0 : i32
    return %arg0, %c0_i32, %c0_i32_0 : i32, i32, i32
  }
  func.func @transform_1(%arg0: i32) -> (i32, i32, i32) {
    %c0_i32 = arith.constant 0 : i32
    %c0_i32_0 = arith.constant 0 : i32
    %c0_i32_1 = arith.constant 0 : i32
    return %arg0, %c0_i32, %c0_i32_0 : i32, i32, i32
  }
  func.func @transform_2(%arg0: i32) -> (i32, i32, i32) {
    %c0_i32 = arith.constant 0 : i32
    %c0_i32_0 = arith.constant 0 : i32
    %c0_i32_1 = arith.constant 0 : i32
    return %arg0, %c0_i32, %c0_i32_0 : i32, i32, i32
  }
  func.func @transform_3(%arg0: i32) -> (i32, i32, i32, i32) {
    %c0_i32 = arith.constant 0 : i32
    %c0_i32_0 = arith.constant 0 : i32
    %c0_i32_1 = arith.constant 0 : i32
    %c0_i32_2 = arith.constant 0 : i32
    return %arg0, %c0_i32, %c0_i32_0, %c0_i32_1 : i32, i32, i32, i32
  }
}

module attributes {stable_mosaic.version = 11 : i64} {
  func.func @_linear_kernel(%arg0: i32, %arg1: i32, %arg2: i32, %arg3: memref<16x64xbf16, #tpu.memory_space<vmem>>, %arg4: memref<64x64xbf16, #tpu.memory_space<vmem>>, %arg5: memref<1x64xf32, #tpu.memory_space<vmem>>, %arg6: memref<16x64xbf16, #tpu.memory_space<vmem>>, %arg7: memref<16x64xf32, #tpu.memory_space<vmem>>) attributes {dimension_semantics = [#tpu.dimension_semantics<parallel>, #tpu.dimension_semantics<parallel>, #tpu.dimension_semantics<arbitrary>], iteration_bounds = array<i64: 1, 1, 1>, scalar_prefetch = 0 : i64, scratch_operands = 1 : i64, tpu.core_type = #tpu.core_type<tc>, window_params = [{transform_indices = @transform_0, window_bounds = array<i64: 16, 64>}, {transform_indices = @transform_1, window_bounds = array<i64: 64, 64>}, {transform_indices = @transform_2, window_bounds = array<i64: 1, 64>}, {transform_indices = @transform_3, window_bounds = array<i64: 16, 64>}]} {
    %c0_i32 = arith.constant 0 : i32
    %0 = arith.cmpi eq, %arg2, %c0_i32 : i32
    %1 = arith.extui %0 : i1 to i32
    %c0_i32_0 = arith.constant 0 : i32
    %2 = arith.cmpi ne, %1, %c0_i32_0 : i32
    scf.if %2 {
      %cst_10 = arith.constant 0.000000e+00 : f32
      %12 = vector.broadcast %cst_10 : f32 to vector<16x64xf32>
      %c0_11 = arith.constant 0 : index
      %c0_12 = arith.constant 0 : index
      %13 = vector.load %arg7[%c0_11, %c0_12] : memref<16x64xf32, #tpu.memory_space<vmem>>, vector<16x64xf32>
      tpu.vector_store %arg7[%c0_11, %c0_12], %12 {strides = array<i32>} : memref<16x64xf32, #tpu.memory_space<vmem>>, vector<16x64xf32>,
    } else {
    }
    %c0 = arith.constant 0 : index
    %c0_1 = arith.constant 0 : index
    %3 = vector.load %arg7[%c0, %c0_1] : memref<16x64xf32, #tpu.memory_space<vmem>>, vector<16x64xf32>
    %c0_2 = arith.constant 0 : index
    %c0_3 = arith.constant 0 : index
    %4 = vector.load %arg3[%c0_2, %c0_3] : memref<16x64xbf16, #tpu.memory_space<vmem>>, vector<16x64xbf16>
    %c0_4 = arith.constant 0 : index
    %c0_5 = arith.constant 0 : index
    %5 = vector.load %arg4[%c0_4, %c0_5] : memref<64x64xbf16, #tpu.memory_space<vmem>>, vector<64x64xbf16>
    %cst = arith.constant dense<0.000000e+00> : vector<16x64xf32>
    %6 = tpu.matmul %4, %5, %cst {dimension_numbers = #tpu.dot_dimension_numbers<[1], [0], [0], [1], [0, 0, 1, 1], [], []>} : vector<16x64xbf16>, vector<64x64xbf16>, vector<16x64xf32> -> vector<16x64xf32>
    %7 = arith.addf %3, %6 : vector<16x64xf32>
    %c0_6 = arith.constant 0 : index
    %c0_7 = arith.constant 0 : index
    %8 = vector.load %arg7[%c0_6, %c0_7] : memref<16x64xf32, #tpu.memory_space<vmem>>, vector<16x64xf32>
    tpu.vector_store %arg7[%c0_6, %c0_7], %7 {strides = array<i32>} : memref<16x64xf32, #tpu.memory_space<vmem>>, vector<16x64xf32>,
    %c0_i32_8 = arith.constant 0 : i32
    %9 = arith.cmpi eq, %arg2, %c0_i32_8 : i32
    %10 = arith.extui %9 : i1 to i32
    %c0_i32_9 = arith.constant 0 : i32
    %11 = arith.cmpi ne, %10, %c0_i32_9 : i32
    scf.if %11 {
      %c0_10 = arith.constant 0 : index
      %c0_11 = arith.constant 0 : index
      %12 = vector.load %arg7[%c0_10, %c0_11] : memref<16x64xf32, #tpu.memory_space<vmem>>, vector<16x64xf32>
      %c0_12 = arith.constant 0 : index
      %c0_13 = arith.constant 0 : index
      %13 = vector.load %arg5[%c0_12, %c0_13] : memref<1x64xf32, #tpu.memory_space<vmem>>, vector<1x64xf32>
      %14 = vector.broadcast %13 : vector<1x64xf32> to vector<16x64xf32>
      %15 = arith.addf %12, %14 : vector<16x64xf32>
      %16 = arith.truncf %15 : vector<16x64xf32> to vector<16x64xbf16>
      %c0_14 = arith.constant 0 : index
      %c0_15 = arith.constant 0 : index
      %17 = vector.load %arg6[%c0_14, %c0_15] : memref<16x64xbf16, #tpu.memory_space<vmem>>, vector<16x64xbf16>
      tpu.vector_store %arg6[%c0_14, %c0_15], %16 {strides = array<i32>} : memref<16x64xbf16, #tpu.memory_space<vmem>>, vector<16x64xbf16>,
    } else {
    }
    return
  }
  func.func @transform_0(%arg0: i32, %arg1: i32, %arg2: i32) -> (i32, i32) {
    %c0_i32 = arith.constant 0 : i32
    return %arg0, %arg2 : i32, i32
  }
  func.func @transform_1(%arg0: i32, %arg1: i32, %arg2: i32) -> (i32, i32) {
    %c0_i32 = arith.constant 0 : i32
    return %arg2, %arg1 : i32, i32
  }
  func.func @transform_2(%arg0: i32, %arg1: i32, %arg2: i32) -> (i32, i32) {
    %c0_i32 = arith.constant 0 : i32
    %c0_i32_0 = arith.constant 0 : i32
    return %c0_i32, %arg1 : i32, i32
  }
  func.func @transform_3(%arg0: i32, %arg1: i32, %arg2: i32) -> (i32, i32) {
    %c0_i32 = arith.constant 0 : i32
    return %arg0, %arg1 : i32, i32
  }
}

module attributes {stable_mosaic.version = 11 : i64} {
  func.func @_linear_kernel(%arg0: i32, %arg1: i32, %arg2: i32, %arg3: memref<16x128xbf16, #tpu.memory_space<vmem>>, %arg4: memref<128x64xbf16, #tpu.memory_space<vmem>>, %arg5: memref<1x64xf32, #tpu.memory_space<vmem>>, %arg6: memref<16x64xf32, #tpu.memory_space<vmem>>, %arg7: memref<16x64xf32, #tpu.memory_space<vmem>>) attributes {dimension_semantics = [#tpu.dimension_semantics<parallel>, #tpu.dimension_semantics<parallel>, #tpu.dimension_semantics<arbitrary>], iteration_bounds = array<i64: 1, 1, 1>, scalar_prefetch = 0 : i64, scratch_operands = 1 : i64, tpu.core_type = #tpu.core_type<tc>, window_params = [{transform_indices = @transform_0, window_bounds = array<i64: 16, 128>}, {transform_indices = @transform_1, window_bounds = array<i64: 128, 64>}, {transform_indices = @transform_2, window_bounds = array<i64: 1, 64>}, {transform_indices = @transform_3, window_bounds = array<i64: 16, 64>}]} {
    %c0_i32 = arith.constant 0 : i32
    %0 = arith.cmpi eq, %arg2, %c0_i32 : i32
    %1 = arith.extui %0 : i1 to i32
    %c0_i32_0 = arith.constant 0 : i32
    %2 = arith.cmpi ne, %1, %c0_i32_0 : i32
    scf.if %2 {
      %cst_10 = arith.constant 0.000000e+00 : f32
      %12 = vector.broadcast %cst_10 : f32 to vector<16x64xf32>
      %c0_11 = arith.constant 0 : index
      %c0_12 = arith.constant 0 : index
      %13 = vector.load %arg7[%c0_11, %c0_12] : memref<16x64xf32, #tpu.memory_space<vmem>>, vector<16x64xf32>
      tpu.vector_store %arg7[%c0_11, %c0_12], %12 {strides = array<i32>} : memref<16x64xf32, #tpu.memory_space<vmem>>, vector<16x64xf32>,
    } else {
    }
    %c0 = arith.constant 0 : index
    %c0_1 = arith.constant 0 : index
    %3 = vector.load %arg7[%c0, %c0_1] : memref<16x64xf32, #tpu.memory_space<vmem>>, vector<16x64xf32>
    %c0_2 = arith.constant 0 : index
    %c0_3 = arith.constant 0 : index
    %4 = vector.load %arg3[%c0_2, %c0_3] : memref<16x128xbf16, #tpu.memory_space<vmem>>, vector<16x128xbf16>
    %c0_4 = arith.constant 0 : index
    %c0_5 = arith.constant 0 : index
    %5 = vector.load %arg4[%c0_4, %c0_5] : memref<128x64xbf16, #tpu.memory_space<vmem>>, vector<128x64xbf16>
    %cst = arith.constant dense<0.000000e+00> : vector<16x64xf32>
    %6 = tpu.matmul %4, %5, %cst {dimension_numbers = #tpu.dot_dimension_numbers<[1], [0], [0], [1], [0, 0, 1, 1], [], []>} : vector<16x128xbf16>, vector<128x64xbf16>, vector<16x64xf32> -> vector<16x64xf32>
    %7 = arith.addf %3, %6 : vector<16x64xf32>
    %c0_6 = arith.constant 0 : index
    %c0_7 = arith.constant 0 : index
    %8 = vector.load %arg7[%c0_6, %c0_7] : memref<16x64xf32, #tpu.memory_space<vmem>>, vector<16x64xf32>
    tpu.vector_store %arg7[%c0_6, %c0_7], %7 {strides = array<i32>} : memref<16x64xf32, #tpu.memory_space<vmem>>, vector<16x64xf32>,
    %c0_i32_8 = arith.constant 0 : i32
    %9 = arith.cmpi eq, %arg2, %c0_i32_8 : i32
    %10 = arith.extui %9 : i1 to i32
    %c0_i32_9 = arith.constant 0 : i32
    %11 = arith.cmpi ne, %10, %c0_i32_9 : i32
    scf.if %11 {
      %c0_10 = arith.constant 0 : index
      %c0_11 = arith.constant 0 : index
      %12 = vector.load %arg7[%c0_10, %c0_11] : memref<16x64xf32, #tpu.memory_space<vmem>>, vector<16x64xf32>
      %c0_12 = arith.constant 0 : index
      %c0_13 = arith.constant 0 : index
      %13 = vector.load %arg5[%c0_12, %c0_13] : memref<1x64xf32, #tpu.memory_space<vmem>>, vector<1x64xf32>
      %14 = vector.broadcast %13 : vector<1x64xf32> to vector<16x64xf32>
      %15 = arith.addf %12, %14 : vector<16x64xf32>
      %c0_14 = arith.constant 0 : index
      %c0_15 = arith.constant 0 : index
      %16 = vector.load %arg6[%c0_14, %c0_15] : memref<16x64xf32, #tpu.memory_space<vmem>>, vector<16x64xf32>
      tpu.vector_store %arg6[%c0_14, %c0_15], %15 {strides = array<i32>} : memref<16x64xf32, #tpu.memory_space<vmem>>, vector<16x64xf32>,
    } else {
    }
    return
  }
  func.func @transform_0(%arg0: i32, %arg1: i32, %arg2: i32) -> (i32, i32) {
    %c0_i32 = arith.constant 0 : i32
    return %arg0, %arg2 : i32, i32
  }
  func.func @transform_1(%arg0: i32, %arg1: i32, %arg2: i32) -> (i32, i32) {
    %c0_i32 = arith.constant 0 : i32
    return %arg2, %arg1 : i32, i32
  }
  func.func @transform_2(%arg0: i32, %arg1: i32, %arg2: i32) -> (i32, i32) {
    %c0_i32 = arith.constant 0 : i32
    %c0_i32_0 = arith.constant 0 : i32
    return %c0_i32, %arg1 : i32, i32
  }
  func.func @transform_3(%arg0: i32, %arg1: i32, %arg2: i32) -> (i32, i32) {
    %c0_i32 = arith.constant 0 : i32
    return %arg0, %arg1 : i32, i32
  }
}

module attributes {stable_mosaic.version = 11 : i64} {
  func.func @_linear_kernel(%arg0: i32, %arg1: i32, %arg2: i32, %arg3: memref<16x64xbf16, #tpu.memory_space<vmem>>, %arg4: memref<64x32xbf16, #tpu.memory_space<vmem>>, %arg5: memref<1x32xf32, #tpu.memory_space<vmem>>, %arg6: memref<16x32xf32, #tpu.memory_space<vmem>>, %arg7: memref<16x32xf32, #tpu.memory_space<vmem>>) attributes {dimension_semantics = [#tpu.dimension_semantics<parallel>, #tpu.dimension_semantics<parallel>, #tpu.dimension_semantics<arbitrary>], iteration_bounds = array<i64: 1, 1, 1>, scalar_prefetch = 0 : i64, scratch_operands = 1 : i64, tpu.core_type = #tpu.core_type<tc>, window_params = [{transform_indices = @transform_0, window_bounds = array<i64: 16, 64>}, {transform_indices = @transform_1, window_bounds = array<i64: 64, 32>}, {transform_indices = @transform_2, window_bounds = array<i64: 1, 32>}, {transform_indices = @transform_3, window_bounds = array<i64: 16, 32>}]} {
    %c0_i32 = arith.constant 0 : i32
    %0 = arith.cmpi eq, %arg2, %c0_i32 : i32
    %1 = arith.extui %0 : i1 to i32
    %c0_i32_0 = arith.constant 0 : i32
    %2 = arith.cmpi ne, %1, %c0_i32_0 : i32
    scf.if %2 {
      %cst_10 = arith.constant 0.000000e+00 : f32
      %12 = vector.broadcast %cst_10 : f32 to vector<16x32xf32>
      %c0_11 = arith.constant 0 : index
      %c0_12 = arith.constant 0 : index
      %13 = vector.load %arg7[%c0_11, %c0_12] : memref<16x32xf32, #tpu.memory_space<vmem>>, vector<16x32xf32>
      tpu.vector_store %arg7[%c0_11, %c0_12], %12 {strides = array<i32>} : memref<16x32xf32, #tpu.memory_space<vmem>>, vector<16x32xf32>,
    } else {
    }
    %c0 = arith.constant 0 : index
    %c0_1 = arith.constant 0 : index
    %3 = vector.load %arg7[%c0, %c0_1] : memref<16x32xf32, #tpu.memory_space<vmem>>, vector<16x32xf32>
    %c0_2 = arith.constant 0 : index
    %c0_3 = arith.constant 0 : index
    %4 = vector.load %arg3[%c0_2, %c0_3] : memref<16x64xbf16, #tpu.memory_space<vmem>>, vector<16x64xbf16>
    %c0_4 = arith.constant 0 : index
    %c0_5 = arith.constant 0 : index
    %5 = vector.load %arg4[%c0_4, %c0_5] : memref<64x32xbf16, #tpu.memory_space<vmem>>, vector<64x32xbf16>
    %cst = arith.constant dense<0.000000e+00> : vector<16x32xf32>
    %6 = tpu.matmul %4, %5, %cst {dimension_numbers = #tpu.dot_dimension_numbers<[1], [0], [0], [1], [0, 0, 1, 1], [], []>} : vector<16x64xbf16>, vector<64x32xbf16>, vector<16x32xf32> -> vector<16x32xf32>
    %7 = arith.addf %3, %6 : vector<16x32xf32>
    %c0_6 = arith.constant 0 : index
    %c0_7 = arith.constant 0 : index
    %8 = vector.load %arg7[%c0_6, %c0_7] : memref<16x32xf32, #tpu.memory_space<vmem>>, vector<16x32xf32>
    tpu.vector_store %arg7[%c0_6, %c0_7], %7 {strides = array<i32>} : memref<16x32xf32, #tpu.memory_space<vmem>>, vector<16x32xf32>,
    %c0_i32_8 = arith.constant 0 : i32
    %9 = arith.cmpi eq, %arg2, %c0_i32_8 : i32
    %10 = arith.extui %9 : i1 to i32
    %c0_i32_9 = arith.constant 0 : i32
    %11 = arith.cmpi ne, %10, %c0_i32_9 : i32
    scf.if %11 {
      %c0_10 = arith.constant 0 : index
      %c0_11 = arith.constant 0 : index
      %12 = vector.load %arg7[%c0_10, %c0_11] : memref<16x32xf32, #tpu.memory_space<vmem>>, vector<16x32xf32>
      %c0_12 = arith.constant 0 : index
      %c0_13 = arith.constant 0 : index
      %13 = vector.load %arg5[%c0_12, %c0_13] : memref<1x32xf32, #tpu.memory_space<vmem>>, vector<1x32xf32>
      %14 = vector.broadcast %13 : vector<1x32xf32> to vector<16x32xf32>
      %15 = arith.addf %12, %14 : vector<16x32xf32>
      %c0_14 = arith.constant 0 : index
      %c0_15 = arith.constant 0 : index
      %16 = vector.load %arg6[%c0_14, %c0_15] : memref<16x32xf32, #tpu.memory_space<vmem>>, vector<16x32xf32>
      tpu.vector_store %arg6[%c0_14, %c0_15], %15 {strides = array<i32>} : memref<16x32xf32, #tpu.memory_space<vmem>>, vector<16x32xf32>,
    } else {
    }
    return
  }
  func.func @transform_0(%arg0: i32, %arg1: i32, %arg2: i32) -> (i32, i32) {
    %c0_i32 = arith.constant 0 : i32
    return %arg0, %arg2 : i32, i32
  }
  func.func @transform_1(%arg0: i32, %arg1: i32, %arg2: i32) -> (i32, i32) {
    %c0_i32 = arith.constant 0 : i32
    return %arg2, %arg1 : i32, i32
  }
  func.func @transform_2(%arg0: i32, %arg1: i32, %arg2: i32) -> (i32, i32) {
    %c0_i32 = arith.constant 0 : i32
    %c0_i32_0 = arith.constant 0 : i32
    return %c0_i32, %arg1 : i32, i32
  }
  func.func @transform_3(%arg0: i32, %arg1: i32, %arg2: i32) -> (i32, i32) {
    %c0_i32 = arith.constant 0 : i32
    return %arg0, %arg1 : i32, i32
  }
}

</mosaic_0001>

<bundles_post_ra>
// kernel: transformer_forward.27
= control target key start
LH: loop header
LB: loop body
LE: loop exit
PB: predicated region body
PF: predicated region fallthrough
CT: control target
= control target key end

     0   :  { %vm19_vm0 = vcmask 523264   ;;  %v130_v1 = vmov 0.0   ;;  %s182_s1 = inlined_call_operand.vmem [shape: bf16[64,64], index: 1, kind: input, shape index: {}]   ;;  %s183_s2 = inlined_call_operand.vmem [shape: f32[1,64], index: 2, kind: input, shape index: {}]   ;;  %s184_s0 = inlined_call_operand.vmem [shape: bf16[16,64], index: 0, kind: input, shape index: {}]   ;;  %s185_s3 = inlined_call_operand.vmem [shape: f32[16,64], index: 3, kind: output, shape index: {}]  }
   0x1   :  { %v127_v0 = vld [vmem:[%s182_s1 + $0x18] sm:$0xff]  ;;  %20 = vst.msk [vmem:[#allocation2] sm:$0xff] %vm19_vm0, %v130_v1  ;;  %v126_v2 = vld [vmem:[%s182_s1 + $0x10] sm:$0xff]  ;;  %v125_v3 = vld [vmem:[%s182_s1 + $0x8] sm:$0xff] }
   0x2   :  { %21 = vst.msk [vmem:[#allocation2 + $0x8] sm:$0xff] %vm19_vm0, %v130_v1  ;;  %71 = vmatpush.bf16.msra.mxu0 %v127_v0  ;;  %v124_v4 = vld [vmem:[%s182_s1] sm:$0xff] }
   0x3   :  { %v123_v5 = vld [vmem:[%s184_s0] sm:$0xff] }
   0x4   :  { %v129_v10 = vld [vmem:[%s183_s2] ss:$0 sm:$0xff] }
   0x6   :  { %72 = vmatpush.bf16.msra.mxu0 %v126_v2 }
   0x8   :  { %v22_v6 = vld [vmem:[#allocation2] sm:$0xff] }
   0x9   :  { %v23_v9 = vld [vmem:[#allocation2 + $0x8] sm:$0xff] }
   0xa   :  { %73 = vmatpush.bf16.msra.mxu0 %v125_v3 }
   0xe   :  { %74 = vmatpush.bf16.msra.mxu0 %v124_v4 }
  0x11   :  { %122 = vmatmul.msk.bf16.vlgmr.msra.gmra.mxu0 %vm19_vm0, %v123_v5 }
  0x8e   :  { %v76_v7 = vpop.f32.mrf.mxu0 }
  0x8f   :  { %v81_v8 = vadd.f32 %v76_v7, %v22_v6 }
  0x91   :  { %83 = vst.msk [vmem:[#allocation2] sm:$0xff] %vm19_vm0, %v81_v8 }
  0x96   :  { %v78_v11 = vpop.f32.mrf.mxu0 }
  0x97   :  { %v82_v12 = vadd.f32 %v78_v11, %v23_v9 }
  0x98   :  { %v88_v13 = vld [vmem:[#allocation2] sm:$0xff] }
  0x99   :  { %v94_v14 = vadd.f32 %v129_v10, %v88_v13  ;;  %84 = vst.msk [vmem:[#allocation2 + $0x8] sm:$0xff] %vm19_vm0, %v82_v12 }
  0x9b   :  { %96 = vst.msk [vmem:[%s185_s3] sm:$0xff] %vm19_vm0, %v94_v14 }
  0xa0   :  { %v89_v15 = vld [vmem:[#allocation2 + $0x8] sm:$0xff] }
  0xa1   :  { %v95_v16 = vadd.f32 %v129_v10, %v89_v15 }
  0xa3   :  { %97 = vst.msk [vmem:[%s185_s3 + $0x8] sm:$0xff] %vm19_vm0, %v95_v16 }

// kernel: transformer_forward.28
= control target key start
LH: loop header
LB: loop body
LE: loop exit
PB: predicated region body
PF: predicated region fallthrough
CT: control target
= control target key end

     0   :  { %vm23_vm0 = vcmask 523264   ;;  %v102_v8 = vmov 64.0   ;;  %s158_s0 = inlined_call_operand.vmem [shape: f32[16,64], index: 0, kind: input, shape index: {}]   ;;  %s159_s1 = inlined_call_operand.vmem [shape: f32[16,64], index: 1, kind: input, shape index: {}]   ;;  %s160_s2 = inlined_call_operand.vmem [shape: f32[1,64], index: 2, kind: input, shape index: {}]   ;;  %s161_s3 = inlined_call_operand.vmem [shape: f32[1,64], index: 3, kind: input, shape index: {}]   ;;  %s162_s4 = inlined_call_operand.vmem [shape: f32[16,64], index: 4, kind: output, shape index: {}]  }
   0x1   :  { %v17_v0 = vld [vmem:[%s158_s0] sm:$0xff]  ;;  %v18_v3 = vld [vmem:[%s158_s0 + $0x8] sm:$0xff]  ;;  %96 = vrcp.f32 %v102_v8 }
   0x2   :  { %v19_v1 = vld [vmem:[%s159_s1] sm:$0xff]  ;;  %v20_v4 = vld [vmem:[%s159_s1 + $0x8] sm:$0xff] }
   0x3   :  { %v21_v2 = vadd.f32 %v19_v1, %v17_v0  ;;  %v22_v6 = vadd.f32 %v20_v4, %v18_v3  ;;  %v94_v39 = vld [vmem:[%s160_s2] ss:$0 sm:$0xff] }
   0x4   :  { %v95_v42 = vld [vmem:[%s161_s3] ss:$0 sm:$0xff] }
   0x5   :  { %v24_v5 = vsel %vm23_vm0, %v21_v2, 0.0  ;;  %v27_v7 = vsel %vm23_vm0, %v22_v6, 0.0 }
   0x6   :  { %25 = vadd.xlane.f32.xlu0 %v24_v5 }
   0x7   :  { %v97_v9 = vpop.eup %96 }
   0x8   :  { %v31_v10 = vmul.f32 64.0, %v97_v9  ;;  %vm35_vm1 = vweird.f32 %v97_v9 }
   0xa   :  { %v32_v11 = vsub.f32 1.0, %v31_v10 }
   0xc   :  { %v33_v12 = vmul.f32 %v97_v9, %v32_v11 }
   0xe   :  { %28 = vadd.xlane.f32.xlu0 %v27_v7  ;;  %v34_v13 = vadd.f32 %v97_v9, %v33_v12 }
  0x10   :  { %v36_v14 = vsel %vm35_vm1, %v97_v9, %v34_v13 }
  0x79   :  { %v26_v15 = vpop.xlane.xlu0 %25 }
  0x7a   :  { %v37_v16 = vmul.f32 %v36_v14, %v26_v15 }
  0x7c   :  { %v39_v17 = vsub.f32 %v21_v2, %v37_v16 }
  0x7e   :  { %v41_v18 = vmul.f32 %v39_v17, %v39_v17 }
  0x80   :  { %v43_v19 = vsel %vm23_vm0, %v41_v18, 0.0 }
  0x81   :  { %44 = vadd.xlane.f32.xlu1 %v43_v19  ;;  %v29_v20 = vpop.xlane.xlu0 %28 }
  0x82   :  { %v38_v21 = vmul.f32 %v36_v14, %v29_v20 }
  0x84   :  { %v40_v22 = vsub.f32 %v22_v6, %v38_v21 }
  0x86   :  { %v42_v23 = vmul.f32 %v40_v22, %v40_v22 }
  0x88   :  { %v46_v24 = vsel %vm23_vm0, %v42_v23, 0.0 }
  0x89   :  { %47 = vadd.xlane.f32.xlu1 %v46_v24 }
  0xf4   :  { %v45_v25 = vpop.xlane.xlu1 %44 }
  0xf5   :  { %v49_v26 = vmul.f32 %v45_v25, %v36_v14 }
  0xf7   :  { %v51_v27 = vadd.f32 1e-05, %v49_v26 }
  0xf9   :  { %98 = vrsqrt.f32 %v51_v27  ;;  %vm59_vm3 = vweird.f32 %v51_v27 }
  0xfc   :  { %v48_v28 = vpop.xlane.xlu1 %47 }
  0xfd   :  { %v50_v29 = vmul.f32 %v48_v28, %v36_v14 }
  0xff   :  { %v99_v30 = vpop.eup %98  ;;  %v52_v31 = vadd.f32 1e-05, %v50_v29 }
 0x100   :  { %v54_v32 = vmul.f32 %v99_v30, %v51_v27  ;;  %vm60_vm2 = vweird.f32 %v99_v30 }
 0x101   :  { %100 = vrsqrt.f32 %v52_v31  ;;  %vm61_vm4 = vmor %vm59_vm3, %vm60_vm2  ;;  %vm69_vm6 = vweird.f32 %v52_v31 }
 0x102   :  { %v55_v33 = vmul.f32 %v99_v30, %v54_v32 }
 0x104   :  { %v56_v34 = vmul.f32 0.5, %v55_v33 }
 0x106   :  { %v57_v35 = vsub.f32 1.5, %v56_v34 }
 0x107   :  { %v101_v36 = vpop.eup %100 }
 0x108   :  { %v58_v37 = vmul.f32 %v99_v30, %v57_v35  ;;  %v64_v38 = vmul.f32 %v101_v36, %v52_v31  ;;  %vm70_vm5 = vweird.f32 %v101_v36 }
 0x109   :  { %vm71_vm7 = vmor %vm69_vm6, %vm70_vm5 }
 0x10a   :  { %v62_v40 = vsel %vm61_vm4, %v99_v30, %v58_v37  ;;  %v65_v41 = vmul.f32 %v101_v36, %v64_v38 }
 0x10b   :  { %v73_v43 = vmul.f32 %v62_v40, %v39_v17 }
 0x10c   :  { %v66_v44 = vmul.f32 0.5, %v65_v41 }
 0x10d   :  { %v79_v45 = vmul.f32 %v94_v39, %v73_v43 }
 0x10e   :  { %v67_v46 = vsub.f32 1.5, %v66_v44 }
 0x10f   :  { %v85_v47 = vadd.f32 %v95_v42, %v79_v45 }
 0x110   :  { %v68_v48 = vmul.f32 %v101_v36, %v67_v46 }
 0x111   :  { %87 = vst.msk [vmem:[%s162_s4] sm:$0xff] %vm23_vm0, %v85_v47 }
 0x112   :  { %v72_v49 = vsel %vm71_vm7, %v101_v36, %v68_v48 }
 0x113   :  { %v74_v50 = vmul.f32 %v72_v49, %v40_v22 }
 0x115   :  { %v80_v51 = vmul.f32 %v94_v39, %v74_v50 }
 0x117   :  { %v86_v52 = vadd.f32 %v95_v42, %v80_v51 }
 0x119   :  { %88 = vst.msk [vmem:[%s162_s4 + $0x8] sm:$0xff] %vm23_vm0, %v86_v52 }

// kernel: transformer_forward.25
= control target key start
LH: loop header
LB: loop body
LE: loop exit
PB: predicated region body
PF: predicated region fallthrough
CT: control target
= control target key end

     0   :  { %vm20_vm0 = vcmask 523264   ;;  %v199_v16 = vmov 0.0   ;;  %vm142_vm1 = vcmask 1043456   ;;  %vm143_vm2 = vcmask 523268   ;;  %s286_s1 = inlined_call_operand.vmem [shape: bf16[64,192], index: 1, kind: input, shape index: {}]   ;;  %s287_s0 = inlined_call_operand.vmem [shape: bf16[16,64], index: 0, kind: input, shape index: {}]   ;;  %s288_s2 = inlined_call_operand.vmem [shape: f32[1,192], index: 2, kind: input, shape index: {}]   ;;  %s289_s3 = inlined_call_operand.vmem [shape: bf16[16,192], index: 3, kind: output, shape index: {}]  }
   0x1   :  { %v181_v0 = vld [vmem:[%s286_s1 + $0x30] sm:$0xf]  ;;  %v197_v1 = vld [vmem:[%s286_s1 + $0x34] sm:$0xf0]  ;;  %v196_v2 = vld [vmem:[%s286_s1 + $0x34] sm:$0xf] }
   0x2   :  { %v182_v3 = vor.u32 %v197_v1, %v181_v0  ;;  %v183_v4 = vld [vmem:[%s286_s1 + $0x38] sm:$0xf0]  ;;  %v173_v5 = vld [vmem:[%s286_s1 + $0x20] sm:$0xf]  ;;  %v195_v6 = vld [vmem:[%s286_s1 + $0x24] sm:$0xf0] }
   0x3   :  { %v186_v7 = vor.u32 %v196_v2, %v183_v4  ;;  %v194_v8 = vld [vmem:[%s286_s1 + $0x24] sm:$0xf]  ;;  %v175_v9 = vld [vmem:[%s286_s1 + $0x28] sm:$0xf0]  ;;  %v174_v10 = vor.u32 %v195_v6, %v173_v5  ;;  %v165_v12 = vld [vmem:[%s286_s1 + $0x10] sm:$0xf] }
   0x4   :  { %91 = vmatpush.bf16.msra.mxu0 %v182_v3  ;;  %v178_v11 = vor.u32 %v194_v8, %v175_v9  ;;  %v193_v13 = vld [vmem:[%s286_s1 + $0x14] sm:$0xf0]  ;;  %v192_v14 = vld [vmem:[%s286_s1 + $0x14] sm:$0xf]  ;;  %v167_v15 = vld [vmem:[%s286_s1 + $0x18] sm:$0xf0] }
   0x5   :  { %105 = vmatpush.bf16.msra.mxu1 %v186_v7  ;;  %21 = vst.msk [vmem:[#allocation2 + $0x8] sm:$0xff] %vm20_vm0, %v199_v16  ;;  %v166_v17 = vor.u32 %v193_v13, %v165_v12  ;;  %v170_v18 = vor.u32 %v192_v14, %v167_v15  ;;  %v157_v19 = vld [vmem:[%s286_s1] sm:$0xf]  ;;  %v191_v20 = vld [vmem:[%s286_s1 + $0x4] sm:$0xf0]  ;;  %vm144_vm3 = vmor %vm143_vm2, %vm142_vm1 }
   0x6   :  { %23 = vst.msk [vmem:[#allocation2 + $0x18] sm:$0xff] %vm20_vm0, %v199_v16  ;;  %v190_v21 = vld [vmem:[%s286_s1 + $0x4] sm:$0xf]  ;;  %v159_v22 = vld [vmem:[%s286_s1 + $0x8] sm:$0xf0]  ;;  %v158_v23 = vor.u32 %v191_v20, %v157_v19 }
   0x7   :  { %v162_v24 = vor.u32 %v190_v21, %v159_v22  ;;  %v189_v25 = vld [vmem:[%s287_s0] sm:$0xff] }
   0x8   :  { %92 = vmatpush.bf16.msra.mxu0 %v174_v10  ;;  %v130_v30 = vld [vmem:[%s288_s2] sm:$0x3] }
   0x9   :  { %106 = vmatpush.bf16.msra.mxu1 %v178_v11  ;;  %v132_v31 = vperm.slane %v130_v30, 0  ;;  %v133_v33 = vperm.slane %v130_v30, 1 }
   0xc   :  { %93 = vmatpush.bf16.msra.mxu0 %v166_v17  ;;  %v25_v26 = vld [vmem:[#allocation2 + $0x8] sm:$0xff] }
   0xd   :  { %107 = vmatpush.bf16.msra.mxu1 %v170_v18  ;;  %v27_v32 = vld [vmem:[#allocation2 + $0x18] sm:$0xff] }
  0x10   :  { %94 = vmatpush.bf16.msra.mxu0 %v158_v23 }
  0x11   :  { %108 = vmatpush.bf16.msra.mxu1 %v162_v24 }
  0x13   :  { %187 = vmatmul.msk.bf16.vlgmr.msra.gmra.mxu0 %vm20_vm0, %v189_v25 }
  0x14   :  { %188 = vmatmul.msk.bf16.vlgmr.msra.gmra.mxu1 %vm20_vm0, %v189_v25 }
  0x90   :  { %v96_v27 = vpop.f32.mrf.mxu0 }
  0x91   :  { %v110_v28 = vpop.f32.mrf.mxu1  ;;  %v136_v36 = vadd.f32 %v132_v31, %v96_v27 }
  0x92   :  { %v116_v29 = vadd.f32 %v110_v28, %v25_v26 }
  0x94   :  { %120 = vst.msk [vmem:[#allocation2 + $0x8] sm:$0xff] %vm20_vm0, %v116_v29 }
  0x98   :  { %v98_v34 = vpop.f32.mrf.mxu0 }
  0x99   :  { %v112_v35 = vpop.f32.mrf.mxu1  ;;  %v138_v42 = vadd.f32 %v132_v31, %v98_v34 }
  0x9a   :  { %v118_v37 = vadd.f32 %v112_v35, %v27_v32 }
  0x9b   :  { %v127_v38 = vld [vmem:[#allocation2 + $0x8] sm:$0xff] }
  0x9c   :  { %v137_v39 = vadd.f32 %v133_v33, %v127_v38  ;;  %122 = vst.msk [vmem:[#allocation2 + $0x18] sm:$0xff] %vm20_vm0, %v118_v37 }
  0x9e   :  { %v140_v40 = vpack.c.bf16 %v137_v39, %v136_v36 }
  0xa0   :  { %145 = vst.msk [vmem:[%s289_s3] sm:$0xff] %vm144_vm3, %v140_v40 }
  0xa3   :  { %v129_v41 = vld [vmem:[#allocation2 + $0x18] sm:$0xff] }
  0xa4   :  { %v139_v43 = vadd.f32 %v133_v33, %v129_v41 }
  0xa6   :  { %v141_v44 = vpack.c.bf16 %v139_v43, %v138_v42 }
  0xa8   :  { %146 = vst.msk [vmem:[%s289_s3 + $0x8] sm:$0xff] %vm144_vm3, %v141_v44 }

// kernel: transformer_forward.26
= control target key start
LH: loop header
LB: loop body
LE: loop exit
PB: predicated region body
PF: predicated region fallthrough
CT: control target
= control target key end

     0   :  { %s586_s12 = smov 0   ;;  %s663_s0 = inlined_call_operand.vmem [shape: bf16[2,8,192], index: 0, kind: input, shape index: {}]   ;;  %s664_s1 = inlined_call_operand.vmem [shape: f32[8,8], index: 1, kind: input, shape index: {}]   ;;  %s665_s2 = inlined_call_operand.vmem [shape: f32[2,1,8], index: 2, kind: input, shape index: {}]   ;;  %s666_s3 = inlined_call_operand.vmem [shape: f32[2,8,64], index: 3, kind: output, shape index: {}]  }
   0x1 LB: > { %s500_s13 = sadd.s32 4294967295, %s557_s12   ;;  %p504_p0 = scmp.ge.s32.totalorder %s557_s12, 1  ;;  %s557_s12 = sphi %s586_s12, %s13_s12  }
   0x2   : > { %p145_p1 = scmp.lt.s32.totalorder %s557_s12, 3 }
   0x4   : > { %p146_p2 = pnand %p504_p0, %p145_p1 }
   0x5   : > { %p171_p3 = scmp.lt.s32.totalorder (!%p146_p2), %s500_s13, 1  ;;  %s559_s21 = smov (!%p146_p2), 64  }
   0x6   : > { %149 = sbr.rel (%p146_p2) target bundleno = 1187 (0x4a3), region = 32  ;;  %s560_s22 = smov (!%p146_p2), 48  }
   0x7   : > { %s561_s23 = smov (!%p146_p2), 112   ;;  %s562_s24 = smov (!%p146_p2), 32  }
   0x8   : > { %s563_s25 = smov (!%p146_p2), 16   ;;  %s564_s26 = smov (!%p146_p2), 96  }
   0x9   : > { %s565_s27 = smov (!%p146_p2), 80  }
   0xb   : > { %s668_s13 = smov (!%p171_p3, %s500_s13), 1  ;;  %vm196_vm0 = vcmask 130048   ;;  %v185_v9 = vld [vmem:[%s664_s1] sm:$0xff]  ;;  %vm216_vm1 = vcmask 64512   ;;  %vm234_vm2 = vcmask 1043456   ;;  %vm432_vm3 = vcmask 261120  }
   0xc   : > { %s518_s14 = sshll.u32 %s668_s13, 3  ;;  %s178_s20 = scalar_lea.vmem %s665_s2, %s668_s13  ;;  %vm434_vm4 = vcmask 392192   ;;  %vm436_vm5 = vcmask 523264  }
   0xd   : > { %s175_s17 = scalar_lea.vmem %s663_s0, %s518_s14  ;;  %v534_v8 = vld [vmem:[%s178_s20] ss:$0 sm:$0xff]  ;;  %s182_s5 = scalar_lea.vmem %s666_s3, %s518_s14 }
   0xe   : > { %v184_v0 = vld [vmem:[%s175_s17] sm:$0xff]  ;;  %v190_v10 = vadd.f32 %v534_v8, %v185_v9 }
   0xf   : > { %v192_v1 = vunpack.c.l.b16 %v184_v0  ;;  %v229_v17 = vunpack.c.h.b16 %v184_v0 }
  0x11   : > { %v193_v2 = vpack.c.b16 %v192_v1, %v192_v1  ;;  %v621_v19 = vpack.c.b16 %v229_v17, %v229_v17 }
  0x13   : > { %194 = vrot.lane.b32.xlu0 %v193_v2, %s559_s21  ;;  %253 = vrot.lane.b32.xlu1 %v193_v2, %s560_s22  ;;  %v236_v21 = vsel %vm234_vm2, %v621_v19, 0 }
  0x14   : > { %251 = vrot.lane.b32.xlu2 %v193_v2, %s561_s23  ;;  %245 = vmatpush.bf16.msra.mxu1 %v236_v21 }
  0x1c   : > { %309 = vrot.lane.b32.xlu2 %v193_v2, %s562_s24 }
  0x24   : > { %365 = vrot.lane.b32.xlu2 %v193_v2, %s563_s25 }
  0x2c   : > { %307 = vrot.lane.b32.xlu2 %v193_v2, %s564_s26 }
  0x34   : > { %363 = vrot.lane.b32.xlu2 %v193_v2, %s565_s27 }
  0x6e   : > { %v252_v7 = vpop.permute.xlu2 %251 }
  0x76   : > { %v310_v15 = vpop.permute.xlu2 %309 }
  0x77   : > { %v315_v20 = vsel %vm196_vm0, %v310_v15, 0 }
  0x78   : > { %324 = vmatpush.bf16.xpose.msrb.mxu1 %v315_v20 }
  0x7e   : > { %v366_v16 = vpop.permute.xlu2 %365 }
  0x7f   : > { %v371_v18 = vsel %vm196_vm0, %v366_v16, 0 }
  0x85   : > { %v195_v3 = vpop.permute.xlu0 %194  ;;  %v254_v5 = vpop.permute.xlu1 %253 }
  0x86   : > { %v201_v4 = vsel %vm196_vm0, %v195_v3, 0  ;;  %v259_v6 = vsel %vm196_vm0, %v254_v5, 0  ;;  %v308_v22 = vpop.permute.xlu2 %307 }
  0x87   : > { %210 = vmatpush.bf16.xpose.msra.mxu0 %v201_v4  ;;  %268 = vmatpush.bf16.xpose.msra.mxu2 %v259_v6 }
  0x8e   : > { %508 = vmatmul.msk.bf16.vlgmr.msra.gmra.mxu0 %vm196_vm0, %v184_v0  ;;  %510 = vmatmul.msk.bf16.vlgmr.msra.gmra.mxu2 %vm196_vm0, %v252_v7  ;;  %v364_v23 = vpop.permute.xlu2 %363 }
  0x8f   : > { %380 = vmatpush.bf16.xpose.msrb.mxu0 %v371_v18 }
  0x9e   : > { %514 = vmatmul.msk.bf16.vlgmr.msrb.gmra.mxu0 %vm196_vm0, %v364_v23 }
 0x10b   : > { %v212_v11 = vpop.f32.mrf.mxu0 }
 0x10c   : > { %v213_v12 = vadd.f32 %v212_v11, %v190_v10 }
 0x10e   : > { %v217_v13 = vsel %vm216_vm1, %v213_v12, -inf }
 0x10f   : > { %218 = vmax.xlane.f32.xlu0 %v217_v13 }
 0x111   : > { %v270_v29 = vpop.f32.mrf.mxu2 }
 0x112   : > { %v271_v30 = vadd.f32 %v270_v29, %v190_v10 }
 0x113   : > { %v214_v14 = vpop.f32.mrf.mxu0 }
 0x114   : > { %v274_v31 = vsel %vm216_vm1, %v271_v30, -inf }
 0x115   : > { %275 = vmax.xlane.f32.xlu2 %v274_v31 }
 0x119   : > { %v272_v32 = vpop.f32.mrf.mxu2 }
 0x11b   : > { %v382_v33 = vpop.f32.mrf.mxu0 }
 0x11c   : > { %v383_v34 = vadd.f32 %v382_v33, %v190_v10 }
 0x11e   : > { %v386_v35 = vsel %vm216_vm1, %v383_v34, -inf }
 0x123   : > { %v384_v37 = vpop.f32.mrf.mxu0 }
 0x12d   : > { %342 = vrot.lane.b32.xlu2 %v621_v19, %s564_s26 }
 0x182   : > { %v219_v24 = vpop.xlane.xlu0 %218 }
 0x183   : > { %v220_v25 = vsub.f32 %v213_v12, %v219_v24 }
 0x185   : > { %v221_v26 = vmul.f32 1.442695, %v220_v25 }
 0x187   : > { %535 = vpow2.f32 %v221_v26 }
 0x188   : > { %v276_v42 = vpop.xlane.xlu2 %275 }
 0x189   : > { %v277_v44 = vsub.f32 %v271_v30, %v276_v42 }
 0x18b   : > { %v278_v45 = vmul.f32 1.442695, %v277_v44 }
 0x18d   : > { %v536_v27 = vpop.eup %535 }
 0x18e   : > { %v223_v28 = vsel %vm216_vm1, %v536_v27, 0.0 }
 0x18f   : > { %224 = vadd.xlane.f32.xlu1 %v223_v28 }
 0x190   : > { %v343_v4 = vpop.permute.xlu2 %342 }
 0x191   : > { %v348_v5 = vsel %vm234_vm2, %v343_v4, 0 }
 0x197   : > { %387 = vmax.xlane.f32.xlu1 %v386_v35 }
 0x1b0   : > { %286 = vrot.lane.b32.xlu1 %v621_v19, %s561_s23 }
 0x202   : > { %v225_v36 = vpop.xlane.xlu1 %224 }
 0x203   : > { %537 = vrcp.f32 %v225_v36 }
 0x204   : > { %539 = vpow2.f32 %v278_v45 }
 0x209   : > { %v538_v38 = vpop.eup %537 }
 0x20a   : > { %v227_v39 = vmul.f32 %v538_v38, %v536_v27  ;;  %v388_v46 = vpop.xlane.xlu1 %387  ;;  %v540_v52 = vpop.eup %539 }
 0x20b   : > { %v389_v49 = vsub.f32 %v383_v34, %v388_v46  ;;  %v280_v54 = vsel %vm216_vm1, %v540_v52, 0.0 }
 0x20c   : > { %v228_v40 = vpack.c.bf16 %v227_v39, %v227_v39 }
 0x20d   : > { %v390_v51 = vmul.f32 1.442695, %v389_v49 }
 0x20e   : > { %509 = vmatmul.msk.bf16.vlgmr.msra.gmra.mxu1 %vm216_vm1, %v228_v40 }
 0x20f   : > { %541 = vpow2.f32 %v390_v51 }
 0x215   : > { %v542_v55 = vpop.eup %541 }
 0x216   : > { %v392_v56 = vsel %vm216_vm1, %v542_v55, 0.0 }
 0x21e   : > { %512 = vmatmul.msk.bf16.vlgmr.msrb.gmra.mxu1 %vm196_vm0, %v308_v22 }
 0x222   : > { %v287_v57 = vpop.permute.xlu1 %286 }
 0x223   : > { %v292_v58 = vsel %vm234_vm2, %v287_v57, 0 }
 0x224   : > { %301 = vmatpush.bf16.msra.mxu3 %v292_v58 }
 0x228   : > { %357 = vmatpush.bf16.msrb.mxu3 %v348_v5 }
 0x28b   : > { %v636_v41 = vpop.f32.mrf.mxu1 }
 0x293   : > { %v249_v43 = vpop.f32.mrf.mxu1 }
 0x29b   : > { %v326_v47 = vpop.f32.mrf.mxu1 }
 0x29c   : > { %v327_v48 = vadd.f32 %v326_v47, %v190_v10 }
 0x29e   : > { %v330_v50 = vsel %vm216_vm1, %v327_v48, -inf }
 0x29f   : > { %331 = vmax.xlane.f32.xlu0 %v330_v50 }
 0x2a3   : > { %v328_v53 = vpop.f32.mrf.mxu1 }
 0x2a7   : > { %281 = vadd.xlane.f32.xlu0 %v280_v54 }
 0x2af   : > { %393 = vadd.xlane.f32.xlu0 %v392_v56 }
 0x312   : > { %v332_v59 = vpop.xlane.xlu0 %331 }
 0x313   : > { %v333_v60 = vsub.f32 %v327_v48, %v332_v59 }
 0x315   : > { %v334_v61 = vmul.f32 1.442695, %v333_v60 }
 0x317   : > { %543 = vpow2.f32 %v334_v61 }
 0x31a   : > { %v282_v62 = vpop.xlane.xlu0 %281 }
 0x31b   : > { %545 = vrcp.f32 %v282_v62 }
 0x31d   : > { %v544_v63 = vpop.eup %543 }
 0x31e   : > { %v336_v0 = vsel %vm216_vm1, %v544_v63, 0.0 }
 0x31f   : > { %337 = vadd.xlane.f32.xlu0 %v336_v0 }
 0x321   : > { %v546_v1 = vpop.eup %545 }
 0x322   : > { %v284_v2 = vmul.f32 %v546_v1, %v540_v52  ;;  %v394_v6 = vpop.xlane.xlu0 %393 }
 0x324   : > { %v285_v3 = vpack.c.bf16 %v284_v2, %v284_v2 }
 0x326   : > { %511 = vmatmul.msk.bf16.vlgmr.msra.gmra.mxu3 %vm216_vm1, %v285_v3 }
 0x333   : > { %398 = vrot.lane.b32.xlu0 %v621_v19, %s565_s27 }
 0x392   : > { %v338_v7 = vpop.xlane.xlu0 %337 }
 0x393   : > { %547 = vrcp.f32 %v338_v7 }
 0x394   : > { %549 = vrcp.f32 %v394_v6 }
 0x399   : > { %v548_v8 = vpop.eup %547 }
 0x39a   : > { %v340_v9 = vmul.f32 %v548_v8, %v544_v63  ;;  %v550_v11 = vpop.eup %549 }
 0x39b   : > { %v396_v12 = vmul.f32 %v550_v11, %v542_v55 }
 0x39c   : > { %v341_v10 = vpack.c.bf16 %v340_v9, %v340_v9 }
 0x39d   : > { %v397_v15 = vpack.c.bf16 %v396_v12, %v396_v12 }
 0x39e   : > { %513 = vmatmul.msk.bf16.vlgmr.msrb.gmra.mxu3 %vm216_vm1, %v341_v10 }
 0x3a5   : > { %v399_v13 = vpop.permute.xlu0 %398 }
 0x3a6   : > { %v404_v14 = vsel %vm234_vm2, %v399_v13, 0 }
 0x3a7   : > { %413 = vmatpush.bf16.msrb.mxu2 %v404_v14 }
 0x3a9   : > { %v303_v16 = vpop.f32.mrf.mxu3 }
 0x3aa   : > { %515 = vmatmul.msk.bf16.vlgmr.msrb.gmra.mxu2 %vm216_vm1, %v397_v15  ;;  %420 = vrot.lane.b32.xlu1 %v303_v16, %s563_s25 }
 0x3b1   : > { %v305_v17 = vpop.f32.mrf.mxu3 }
 0x41c   : > { %v421_v22 = vpop.permute.xlu1 %420 }
 0x41d   : > { %v431_v24 = vsel %vm196_vm0, %v636_v41, %v421_v22 }
 0x421   : > { %v359_v18 = vpop.f32.mrf.mxu3 }
 0x422   : > { %424 = vrot.lane.b32.xlu1 %v359_v18, %s562_s24 }
 0x429   : > { %v361_v19 = vpop.f32.mrf.mxu3 }
 0x42d   : > { %v415_v20 = vpop.f32.mrf.mxu2 }
 0x42e   : > { %428 = vrot.lane.b32.xlu1 %v415_v20, %s560_s22 }
 0x435   : > { %v417_v21 = vpop.f32.mrf.mxu2 }
 0x494   : > { %v425_v23 = vpop.permute.xlu1 %424 }
 0x495   : > { %v433_v25 = vsel %vm432_vm3, %v431_v24, %v425_v23 }
 0x4a0   : > { %v429_v26 = vpop.permute.xlu1 %428 }
 0x4a1   : > { %v435_v27 = vsel %vm434_vm4, %v433_v25, %v429_v26 }
 0x4a2   : > { %437 = vst.msk [vmem:[%s182_s5] sm:$0xff] %vm436_vm5, %v435_v27 }
 0x4a3 PF: > { %s13_s12 = sadd.s32 1, %s557_s12  }
 0x4a4   : > { %p10_p4 = scmp.ge.s32.totalorder %s13_s12, 4  }
 0x4a6   :  { %12 = sbr.rel (!%p10_p4) target bundleno = 1 (0x1), region = 65 }

// kernel: transformer_forward.30
= control target key start
LH: loop header
LB: loop body
LE: loop exit
PB: predicated region body
PF: predicated region fallthrough
CT: control target
= control target key end

     0   :  { %vm73_vm0 = vcmask 523264   ;;  %s229_s1 = inlined_call_operand.vmem [shape: bf16[64,128], index: 1, kind: input, shape index: {}]   ;;  %s230_s2 = inlined_call_operand.vmem [shape: f32[1,128], index: 2, kind: input, shape index: {}]   ;;  %s231_s0 = inlined_call_operand.vmem [shape: bf16[32,64], index: 0, kind: input, shape index: {}]   ;;  %s232_s3 = inlined_call_operand.vmem [shape: bf16[32,128], index: 3, kind: output, shape index: {}]  }
   0x1   :  { %v165_v0 = vld [vmem:[%s229_s1 + $0x18] sm:$0xff]  ;;  %v164_v1 = vld [vmem:[%s229_s1 + $0x10] sm:$0xff]  ;;  %v163_v2 = vld [vmem:[%s229_s1 + $0x8] sm:$0xff] }
   0x2   :  { %84 = vmatpush.bf16.msra.mxu0 %v165_v0  ;;  %177 = vmatpush.bf16.msra.mxu1 %v165_v0  ;;  %v162_v3 = vld [vmem:[%s229_s1] sm:$0xff]  ;;  %v161_v5 = vld [vmem:[%s231_s0 + $0x8] sm:$0xff] }
   0x3   :  { %v160_v4 = vld [vmem:[%s231_s0] sm:$0xff] }
   0x4   :  { %v181_v8 = vld [vmem:[%s230_s2] ss:$0 sm:$0xff] }
   0x6   :  { %85 = vmatpush.bf16.msra.mxu0 %v164_v1  ;;  %178 = vmatpush.bf16.msra.mxu1 %v164_v1 }
   0xa   :  { %86 = vmatpush.bf16.msra.mxu0 %v163_v2  ;;  %179 = vmatpush.bf16.msra.mxu1 %v163_v2 }
   0xe   :  { %87 = vmatpush.bf16.msra.mxu0 %v162_v3  ;;  %180 = vmatpush.bf16.msra.mxu1 %v162_v3 }
  0x11   :  { %158 = vmatmul.msk.bf16.vlgmr.msra.gmra.mxu0 %vm73_vm0, %v160_v4  ;;  %159 = vmatmul.msk.bf16.vlgmr.msra.gmra.mxu1 %vm73_vm0, %v161_v5 }
  0x8e   :  { %v89_v6 = vpop.f32.mrf.mxu0  ;;  %v94_v7 = vpop.f32.mrf.mxu1 }
  0x8f   :  { %v118_v11 = vadd.f32 %v181_v8, %v89_v6  ;;  %v120_v12 = vadd.f32 %v181_v8, %v94_v7 }
  0x96   :  { %v91_v9 = vpop.f32.mrf.mxu0  ;;  %v96_v10 = vpop.f32.mrf.mxu1 }
  0x97   :  { %v119_v13 = vadd.f32 %v181_v8, %v91_v9  ;;  %v121_v14 = vadd.f32 %v181_v8, %v96_v10 }
  0x99   :  { %v169_v15 = vpack.c.bf16 %v119_v13, %v118_v11  ;;  %v174_v16 = vpack.c.bf16 %v121_v14, %v120_v12 }
  0x9b   :  { %170 = vst [vmem:[%s232_s3] sm:$0xff] %v169_v15  }
  0x9c   :  { %176 = vst [vmem:[%s232_s3 + $0x8] sm:$0xff] %v174_v16  }

// kernel: transformer_forward.34
= control target key start
LH: loop header
LB: loop body
LE: loop exit
PB: predicated region body
PF: predicated region fallthrough
CT: control target
= control target key end

     0   :  { %vm62_vm0 = vcmask 523264   ;;  %s178_s1 = inlined_call_operand.vmem [shape: bf16[64,128], index: 1, kind: input, shape index: {}]   ;;  %s179_s2 = inlined_call_operand.vmem [shape: f32[1,128], index: 2, kind: input, shape index: {}]   ;;  %s180_s0 = inlined_call_operand.vmem [shape: bf16[16,64], index: 0, kind: input, shape index: {}]   ;;  %s181_s3 = inlined_call_operand.vmem [shape: bf16[16,128], index: 3, kind: output, shape index: {}]  }
   0x1   :  { %v130_v0 = vld [vmem:[%s178_s1 + $0x18] sm:$0xff]  ;;  %v129_v1 = vld [vmem:[%s178_s1 + $0x10] sm:$0xff]  ;;  %v128_v2 = vld [vmem:[%s178_s1 + $0x8] sm:$0xff] }
   0x2   :  { %70 = vmatpush.bf16.msra.mxu0 %v130_v0  ;;  %v127_v3 = vld [vmem:[%s178_s1] sm:$0xff] }
   0x3   :  { %v126_v4 = vld [vmem:[%s180_s0] sm:$0xff] }
   0x4   :  { %v136_v6 = vld [vmem:[%s179_s2] ss:$0 sm:$0xff] }
   0x6   :  { %71 = vmatpush.bf16.msra.mxu0 %v129_v1 }
   0xa   :  { %72 = vmatpush.bf16.msra.mxu0 %v128_v2 }
   0xe   :  { %73 = vmatpush.bf16.msra.mxu0 %v127_v3 }
  0x11   :  { %125 = vmatmul.msk.bf16.vlgmr.msra.gmra.mxu0 %vm62_vm0, %v126_v4 }
  0x8e   :  { %v75_v5 = vpop.f32.mrf.mxu0 }
  0x8f   :  { %v93_v7 = vadd.f32 %v136_v6, %v75_v5 }
  0x91   :  { %v95_v10 = vmax.f32 %v93_v7, 0.0 }
  0x96   :  { %v77_v8 = vpop.f32.mrf.mxu0 }
  0x97   :  { %v94_v9 = vadd.f32 %v136_v6, %v77_v8 }
  0x99   :  { %v96_v11 = vmax.f32 %v94_v9, 0.0 }
  0x9b   :  { %v134_v12 = vpack.c.bf16 %v96_v11, %v95_v10 }
  0x9d   :  { %135 = vst [vmem:[%s181_s3] sm:$0xff] %v134_v12  }

// kernel: transformer_forward.29
= control target key start
LH: loop header
LB: loop body
LE: loop exit
PB: predicated region body
PF: predicated region fallthrough
CT: control target
= control target key end

     0   :  { %vm19_vm0 = vcmask 523264   ;;  %v133_v1 = vmov 0.0   ;;  %vm98_vm1 = vcmask 519168   ;;  %s183_s1 = inlined_call_operand.vmem [shape: bf16[64,64], index: 1, kind: input, shape index: {}]   ;;  %s184_s2 = inlined_call_operand.vmem [shape: f32[1,64], index: 2, kind: input, shape index: {}]   ;;  %s185_s0 = inlined_call_operand.vmem [shape: bf16[16,64], index: 0, kind: input, shape index: {}]   ;;  %s186_s3 = inlined_call_operand.vmem [shape: bf16[16,64], index: 3, kind: output, shape index: {}]  }
   0x1   :  { %v130_v0 = vld [vmem:[%s183_s1 + $0x18] sm:$0xff]  ;;  %20 = vst.msk [vmem:[#allocation2] sm:$0xff] %vm19_vm0, %v133_v1  ;;  %v129_v2 = vld [vmem:[%s183_s1 + $0x10] sm:$0xff]  ;;  %v128_v3 = vld [vmem:[%s183_s1 + $0x8] sm:$0xff] }
   0x2   :  { %21 = vst.msk [vmem:[#allocation2 + $0x8] sm:$0xff] %vm19_vm0, %v133_v1  ;;  %71 = vmatpush.bf16.msra.mxu0 %v130_v0  ;;  %v127_v4 = vld [vmem:[%s183_s1] sm:$0xff] }
   0x3   :  { %v126_v5 = vld [vmem:[%s185_s0] sm:$0xff] }
   0x4   :  { %v132_v10 = vld [vmem:[%s184_s2] ss:$0 sm:$0xff] }
   0x6   :  { %72 = vmatpush.bf16.msra.mxu0 %v129_v2 }
   0x8   :  { %v22_v6 = vld [vmem:[#allocation2] sm:$0xff] }
   0x9   :  { %v23_v9 = vld [vmem:[#allocation2 + $0x8] sm:$0xff] }
   0xa   :  { %73 = vmatpush.bf16.msra.mxu0 %v128_v3 }
   0xe   :  { %74 = vmatpush.bf16.msra.mxu0 %v127_v4 }
  0x11   :  { %125 = vmatmul.msk.bf16.vlgmr.msra.gmra.mxu0 %vm19_vm0, %v126_v5 }
  0x8e   :  { %v76_v7 = vpop.f32.mrf.mxu0 }
  0x8f   :  { %v81_v8 = vadd.f32 %v76_v7, %v22_v6 }
  0x91   :  { %83 = vst.msk [vmem:[#allocation2] sm:$0xff] %vm19_vm0, %v81_v8 }
  0x96   :  { %v78_v11 = vpop.f32.mrf.mxu0 }
  0x97   :  { %v82_v12 = vadd.f32 %v78_v11, %v23_v9 }
  0x98   :  { %v88_v13 = vld [vmem:[#allocation2] sm:$0xff] }
  0x99   :  { %v94_v14 = vadd.f32 %v132_v10, %v88_v13  ;;  %84 = vst.msk [vmem:[#allocation2 + $0x8] sm:$0xff] %vm19_vm0, %v82_v12 }
  0x9b   :  { %v96_v15 = vpack.c.bf16 %v94_v14, %v94_v14 }
  0x9d   :  { %99 = vst.msk [vmem:[%s186_s3] sm:$0xf] %vm98_vm1, %v96_v15 }
  0xa0   :  { %v89_v16 = vld [vmem:[#allocation2 + $0x8] sm:$0xff] }
  0xa1   :  { %v95_v17 = vadd.f32 %v132_v10, %v89_v16 }
  0xa3   :  { %v97_v18 = vpack.c.bf16 %v95_v17, %v95_v17 }
  0xa5   :  { %100 = vst.msk [vmem:[%s186_s3 + $0x4] sm:$0xf] %vm98_vm1, %v97_v18 }

// kernel: transformer_forward.31
= control target key start
LH: loop header
LB: loop body
LE: loop exit
PB: predicated region body
PF: predicated region fallthrough
CT: control target
= control target key end

     0   :  { %s645_s12 = smov 0   ;;  %s725_s0 = inlined_call_operand.vmem [shape: bf16[2,8,64], index: 0, kind: input, shape index: {}]   ;;  %s726_s1 = inlined_call_operand.vmem [shape: bf16[2,16,128], index: 1, kind: input, shape index: {}]   ;;  %s727_s2 = inlined_call_operand.vmem [shape: f32[2,8,64], index: 2, kind: output, shape index: {0}]   ;;  %s728_s3 = inlined_call_operand.vmem [shape: f32[2,4,8,16], index: 3, kind: output, shape index: {1}]  }
   0x1 LB: > { %s548_s13 = sadd.s32 4294967295, %s616_s12   ;;  %p552_p0 = scmp.ge.s32.totalorder %s616_s12, 1  ;;  %s616_s12 = sphi %s645_s12, %s14_s12  }
   0x2   : > { %p149_p1 = scmp.lt.s32.totalorder %s616_s12, 3 }
   0x4   : > { %p150_p2 = pnand %p552_p0, %p149_p1 }
   0x5   : > { %p181_p3 = scmp.lt.s32.totalorder (!%p150_p2), %s548_s13, 1  ;;  %s618_s22 = smov (!%p150_p2), 64  }
   0x6   : > { %153 = sbr.rel (%p150_p2) target bundleno = 1072 (0x430), region = 28  ;;  %s619_s23 = smov (!%p150_p2), 96  }
   0x7   : > { %s620_s24 = smov (!%p150_p2), 80   ;;  %s621_s25 = smov (!%p150_p2), 112  }
   0x8   : > { %s622_s30 = smov (!%p150_p2), 48   ;;  %s623_s4 = smov (!%p150_p2), 32  }
   0x9   : > { %s624_s5 = smov (!%p150_p2), 16  }
   0xb   : > { %s730_s13 = smov (!%p181_p3, %s548_s13), 1  ;;  %vm208_vm0 = vcmask 130048   ;;  %vm444_vm1 = vcmask 261120   ;;  %vm446_vm2 = vcmask 392192   ;;  %vm448_vm3 = vcmask 523264  }
   0xc   : > { %s576_s14 = sshll.u32 %s730_s13, 3  ;;  %s553_s18 = sshll.u32 %s730_s13, 2 }
   0xd   : > { %s189_s17 = scalar_lea.vmem %s726_s1, %s576_s14  ;;  %s184_s21 = scalar_lea.vmem %s725_s0, %s553_s18 }
   0xe   : > { %v661_v0 = vld [vmem:[%s189_s17] sm:$0xff]  ;;  %s577_s26 = sshll.u32 %s730_s13, 5  ;;  %s193_s8 = scalar_lea.vmem %s727_s2, %s576_s14 }
   0xf   : > { %v213_v1 = vsel %vm208_vm0, %v661_v0, 0  ;;  %v200_v2 = vld [vmem:[%s184_s21] sm:$0xf]  ;;  %241 = vrot.lane.b32.xlu2 %v661_v0, %s618_s22  ;;  %s684_s29 = scalar_lea.vmem %s728_s3, %s577_s26 }
  0x10   : > { %222 = vmatpush.bf16.xpose.msra.mxu0 %v213_v1  ;;  %v261_v3 = vunpack.c.l.b16 %v200_v2 }
  0x12   : > { %v262_v4 = vpack.c.b16 %v261_v3, %v261_v3 }
  0x17   : > { %563 = vmatmul.msk.bf16.vlgmr.msra.gmra.mxu0 %vm208_vm0, %v200_v2  ;;  %321 = vrot.lane.b32.xlu2 %v661_v0, %s619_s23 }
  0x1f   : > { %377 = vrot.lane.b32.xlu2 %v661_v0, %s620_s24 }
  0x27   : > { %319 = vrot.lane.b32.xlu2 %v262_v4, %s619_s23 }
  0x69   : > { %v242_v8 = vpop.permute.xlu2 %241 }
  0x6a   : > { %254 = vmatpush.bf16.msra.mxu1 %v242_v8 }
  0x71   : > { %v322_v9 = vpop.permute.xlu2 %321 }
  0x72   : > { %v327_v19 = vsel %vm208_vm0, %v322_v9, 0 }
  0x73   : > { %336 = vmatpush.bf16.xpose.msrb.mxu1 %v327_v19 }
  0x79   : > { %v378_v13 = vpop.permute.xlu2 %377 }
  0x7a   : > { %v383_v14 = vsel %vm208_vm0, %v378_v13, 0 }
  0x7b   : > { %392 = vmatpush.bf16.xpose.msrb.mxu0 %v383_v14 }
  0x81   : > { %v320_v26 = vpop.permute.xlu2 %319 }
  0x94   : > { %v224_v5 = vpop.f32.mrf.mxu0 }
  0x95   : > { %v228_v6 = vsel %vm208_vm0, %v224_v5, -inf }
  0x96   : > { %229 = vmax.xlane.f32.xlu0 %v228_v6 }
  0x9c   : > { %v226_v7 = vpop.f32.mrf.mxu0 }
  0xaa   : > { %265 = vrot.lane.b32.xlu0 %v661_v0, %s621_s25 }
  0xb2   : > { %375 = vrot.lane.b32.xlu0 %v262_v4, %s620_s24 }
 0x109   : > { %v230_v10 = vpop.xlane.xlu0 %229 }
 0x10a   : > { %v231_v11 = vsub.f32 %v224_v5, %v230_v10 }
 0x10c   : > { %v232_v12 = vmul.f32 1.442695, %v231_v11 }
 0x10e   : > { %594 = vpow2.f32 %v232_v12 }
 0x114   : > { %v595_v15 = vpop.eup %594 }
 0x115   : > { %v234_v16 = vsel %vm208_vm0, %v595_v15, 0.0 }
 0x116   : > { %235 = vadd.xlane.f32.xlu1 %v234_v16 }
 0x11c   : > { %v266_v17 = vpop.permute.xlu0 %265 }
 0x11d   : > { %v271_v20 = vsel %vm208_vm0, %v266_v17, 0 }
 0x11e   : > { %280 = vmatpush.bf16.xpose.msra.mxu2 %v271_v20 }
 0x124   : > { %v376_v18 = vpop.permute.xlu0 %375 }
 0x125   : > { %571 = vmatmul.msk.bf16.vlgmr.msrb.gmra.mxu0 %vm208_vm0, %v376_v18 }
 0x12f   : > { %263 = vrot.lane.b32.xlu1 %v262_v4, %s621_s25 }
 0x189   : > { %v236_v21 = vpop.xlane.xlu1 %235 }
 0x18a   : > { %596 = vrcp.f32 %v236_v21 }
 0x190   : > { %v597_v22 = vpop.eup %596 }
 0x191   : > { %v238_v23 = vmul.f32 %v597_v22, %v595_v15 }
 0x193   : > { %239 = vst.msk [vmem:[%s684_s29] sm:$0xff] %vm208_vm0, %v238_v23  ;;  %v240_v24 = vpack.c.bf16 %v238_v23, %v238_v23 }
 0x195   : > { %564 = vmatmul.msk.bf16.vlgmr.msra.gmra.mxu1 %vm208_vm0, %v240_v24 }
 0x1a1   : > { %v264_v25 = vpop.permute.xlu1 %263 }
 0x1a2   : > { %565 = vmatmul.msk.bf16.vlgmr.msra.gmra.mxu2 %vm208_vm0, %v264_v25  ;;  %v394_v27 = vpop.f32.mrf.mxu0 }
 0x1a3   : > { %v398_v28 = vsel %vm208_vm0, %v394_v27, -inf }
 0x1a4   : > { %399 = vmax.xlane.f32.xlu0 %v398_v28 }
 0x1a5   : > { %568 = vmatmul.msk.bf16.vlgmr.msrb.gmra.mxu1 %vm208_vm0, %v320_v26 }
 0x1aa   : > { %v396_v29 = vpop.f32.mrf.mxu0 }
 0x212   : > { %v692_v30 = vpop.f32.mrf.mxu1 }
 0x217   : > { %v400_v40 = vpop.xlane.xlu0 %399 }
 0x218   : > { %v401_v44 = vsub.f32 %v394_v27, %v400_v40 }
 0x21a   : > { %v258_v31 = vpop.f32.mrf.mxu1  ;;  %v402_v46 = vmul.f32 1.442695, %v401_v44 }
 0x222   : > { %v338_v32 = vpop.f32.mrf.mxu1 }
 0x223   : > { %v342_v33 = vsel %vm208_vm0, %v338_v32, -inf }
 0x224   : > { %343 = vmax.xlane.f32.xlu1 %v342_v33 }
 0x225   : > { %v282_v34 = vpop.f32.mrf.mxu2 }
 0x226   : > { %v286_v35 = vsel %vm208_vm0, %v282_v34, -inf }
 0x227   : > { %287 = vmax.xlane.f32.xlu2 %v286_v35 }
 0x22a   : > { %v340_v36 = vpop.f32.mrf.mxu1 }
 0x22d   : > { %v284_v37 = vpop.f32.mrf.mxu2 }
 0x23d   : > { %300 = vrot.lane.b32.xlu1 %v661_v0, %s622_s30 }
 0x297   : > { %v344_v38 = vpop.xlane.xlu1 %343 }
 0x298   : > { %v345_v39 = vsub.f32 %v338_v32, %v344_v38 }
 0x29a   : > { %v346_v41 = vmul.f32 1.442695, %v345_v39  ;;  %v288_v42 = vpop.xlane.xlu2 %287 }
 0x29b   : > { %v289_v43 = vsub.f32 %v282_v34, %v288_v42 }
 0x29c   : > { %598 = vpow2.f32 %v346_v41 }
 0x29d   : > { %v290_v45 = vmul.f32 1.442695, %v289_v43 }
 0x29f   : > { %600 = vpow2.f32 %v290_v45 }
 0x2a0   : > { %602 = vpow2.f32 %v402_v46 }
 0x2a2   : > { %v599_v47 = vpop.eup %598 }
 0x2a3   : > { %v348_v48 = vsel %vm208_vm0, %v599_v47, 0.0 }
 0x2a4   : > { %349 = vadd.xlane.f32.xlu0 %v348_v48 }
 0x2a5   : > { %v601_v49 = vpop.eup %600 }
 0x2a6   : > { %v292_v50 = vsel %vm208_vm0, %v601_v49, 0.0  ;;  %v603_v51 = vpop.eup %602 }
 0x2a7   : > { %293 = vadd.xlane.f32.xlu2 %v292_v50  ;;  %v404_v52 = vsel %vm208_vm0, %v603_v51, 0.0 }
 0x2af   : > { %405 = vadd.xlane.f32.xlu2 %v404_v52  ;;  %v301_v53 = vpop.permute.xlu1 %300 }
 0x2b0   : > { %313 = vmatpush.bf16.msra.mxu3 %v301_v53 }
 0x2b8   : > { %356 = vrot.lane.b32.xlu0 %v661_v0, %s623_s4 }
 0x2c7   : > { %412 = vrot.lane.b32.xlu2 %v661_v0, %s624_s5 }
 0x317   : > { %v350_v54 = vpop.xlane.xlu0 %349 }
 0x318   : > { %604 = vrcp.f32 %v350_v54 }
 0x31a   : > { %v294_v55 = vpop.xlane.xlu2 %293 }
 0x31b   : > { %606 = vrcp.f32 %v294_v55 }
 0x31e   : > { %v605_v56 = vpop.eup %604 }
 0x31f   : > { %v352_v57 = vmul.f32 %v605_v56, %v599_v47 }
 0x321   : > { %v607_v58 = vpop.eup %606  ;;  %569 = vst.msk [vmem:[%s684_s29 + $0x10] sm:$0xff] %vm208_vm0, %v352_v57  ;;  %v355_v3 = vpack.c.bf16 %v352_v57, %v352_v57 }
 0x322   : > { %v406_v59 = vpop.xlane.xlu2 %405  ;;  %v296_v60 = vmul.f32 %v607_v58, %v601_v49 }
 0x323   : > { %608 = vrcp.f32 %v406_v59 }
 0x324   : > { %566 = vst.msk [vmem:[%s684_s29 + $0x8] sm:$0xff] %vm208_vm0, %v296_v60  ;;  %v299_v61 = vpack.c.bf16 %v296_v60, %v296_v60 }
 0x326   : > { %567 = vmatmul.msk.bf16.vlgmr.msra.gmra.mxu3 %vm208_vm0, %v299_v61 }
 0x329   : > { %v609_v62 = vpop.eup %608 }
 0x32a   : > { %v408_v63 = vmul.f32 %v609_v62, %v603_v51  ;;  %v413_v0 = vpop.permute.xlu2 %412  ;;  %v357_v1 = vpop.permute.xlu0 %356 }
 0x32b   : > { %369 = vmatpush.bf16.msrb.mxu3 %v357_v1  ;;  %425 = vmatpush.bf16.msrb.mxu2 %v413_v0 }
 0x32c   : > { %572 = vst.msk [vmem:[%s684_s29 + $0x18] sm:$0xff] %vm208_vm0, %v408_v63  ;;  %v411_v2 = vpack.c.bf16 %v408_v63, %v408_v63 }
 0x32e   : > { %573 = vmatmul.msk.bf16.vlgmr.msrb.gmra.mxu2 %vm208_vm0, %v411_v2 }
 0x336   : > { %570 = vmatmul.msk.bf16.vlgmr.msrb.gmra.mxu3 %vm208_vm0, %v355_v3 }
 0x3a9   : > { %v315_v4 = vpop.f32.mrf.mxu3 }
 0x3aa   : > { %432 = vrot.lane.b32.xlu1 %v315_v4, %s624_s5 }
 0x3b1   : > { %v317_v5 = vpop.f32.mrf.mxu3  ;;  %v427_v6 = vpop.f32.mrf.mxu2 }
 0x3b2   : > { %440 = vrot.lane.b32.xlu1 %v427_v6, %s622_s30 }
 0x3b9   : > { %v371_v7 = vpop.f32.mrf.mxu3  ;;  %v429_v8 = vpop.f32.mrf.mxu2 }
 0x3ba   : > { %436 = vrot.lane.b32.xlu0 %v371_v7, %s623_s4 }
 0x3c1   : > { %v373_v9 = vpop.f32.mrf.mxu3 }
 0x41c   : > { %v433_v10 = vpop.permute.xlu1 %432 }
 0x41d   : > { %v443_v11 = vsel %vm208_vm0, %v692_v30, %v433_v10 }
 0x424   : > { %v441_v13 = vpop.permute.xlu1 %440 }
 0x42c   : > { %v437_v12 = vpop.permute.xlu0 %436 }
 0x42d   : > { %v445_v14 = vsel %vm444_vm1, %v443_v11, %v437_v12 }
 0x42e   : > { %v447_v15 = vsel %vm446_vm2, %v445_v14, %v441_v13 }
 0x42f   : > { %449 = vst.msk [vmem:[%s193_s8] sm:$0xff] %vm448_vm3, %v447_v15 }
 0x430 PF: > { %s14_s12 = sadd.s32 1, %s616_s12  }
 0x431   : > { %p11_p4 = scmp.ge.s32.totalorder %s14_s12, 4  }
 0x433   :  { %13 = sbr.rel (!%p11_p4) target bundleno = 1 (0x1), region = 76 }

// kernel: transformer_forward.35
= control target key start
LH: loop header
LB: loop body
LE: loop exit
PB: predicated region body
PF: predicated region fallthrough
CT: control target
= control target key end

     0   :  { %vm18_vm0 = vcmask 523264   ;;  %v178_v2 = vmov 0.0   ;;  %s241_s1 = inlined_call_operand.vmem [shape: bf16[128,64], index: 1, kind: input, shape index: {}]   ;;  %s242_s2 = inlined_call_operand.vmem [shape: f32[1,64], index: 2, kind: input, shape index: {}]   ;;  %s243_s0 = inlined_call_operand.vmem [shape: bf16[16,128], index: 0, kind: input, shape index: {}]   ;;  %s244_s3 = inlined_call_operand.vmem [shape: f32[16,64], index: 3, kind: output, shape index: {}]  }
   0x1   :  { %v175_v0 = vld [vmem:[%s241_s1 + $0x38] sm:$0xff]  ;;  %v174_v1 = vld [vmem:[%s241_s1 + $0x30] sm:$0xff]  ;;  %19 = vst.msk [vmem:[#allocation2] sm:$0xff] %vm18_vm0, %v178_v2  ;;  %v173_v3 = vld [vmem:[%s241_s1 + $0x28] sm:$0xff] }
   0x2   :  { %95 = vmatpush.bf16.msra.mxu0 %v175_v0  ;;  %20 = vst.msk [vmem:[#allocation2 + $0x8] sm:$0xff] %vm18_vm0, %v178_v2  ;;  %v172_v4 = vld [vmem:[%s241_s1 + $0x20] sm:$0xff]  ;;  %v171_v5 = vld [vmem:[%s241_s1 + $0x18] sm:$0xff]  ;;  %v170_v6 = vld [vmem:[%s241_s1 + $0x10] sm:$0xff] }
   0x3   :  { %v169_v7 = vld [vmem:[%s241_s1 + $0x8] sm:$0xff]  ;;  %v168_v8 = vld [vmem:[%s241_s1] sm:$0xff] }
   0x4   :  { %v167_v9 = vld [vmem:[%s243_s0] sm:$0xff] }
   0x5   :  { %v177_v14 = vld [vmem:[%s242_s2] ss:$0 sm:$0xff] }
   0x6   :  { %96 = vmatpush.bf16.msra.mxu0 %v174_v1 }
   0x8   :  { %v21_v10 = vld [vmem:[#allocation2] sm:$0xff] }
   0x9   :  { %v22_v13 = vld [vmem:[#allocation2 + $0x8] sm:$0xff] }
   0xa   :  { %97 = vmatpush.bf16.msra.mxu0 %v173_v3 }
   0xe   :  { %98 = vmatpush.bf16.msra.mxu0 %v172_v4 }
  0x12   :  { %99 = vmatpush.bf16.msra.mxu0 %v171_v5 }
  0x16   :  { %100 = vmatpush.bf16.msra.mxu0 %v170_v6 }
  0x1a   :  { %101 = vmatpush.bf16.msra.mxu0 %v169_v7 }
  0x1e   :  { %102 = vmatpush.bf16.msra.mxu0 %v168_v8 }
  0x21   :  { %103 = vmatmul.bf16.vlgmr.msra.gmra.mxu0 %v167_v9 }
  0x9e   :  { %v104_v11 = vpop.f32.mrf.mxu0 }
  0x9f   :  { %v109_v12 = vadd.f32 %v104_v11, %v21_v10 }
  0xa1   :  { %112 = vst.msk [vmem:[#allocation2] sm:$0xff] %vm18_vm0, %v109_v12 }
  0xa6   :  { %v106_v15 = vpop.f32.mrf.mxu0 }
  0xa7   :  { %v110_v16 = vadd.f32 %v106_v15, %v22_v13 }
  0xa8   :  { %v117_v17 = vld [vmem:[#allocation2] sm:$0xff] }
  0xa9   :  { %v123_v18 = vadd.f32 %v177_v14, %v117_v17  ;;  %113 = vst.msk [vmem:[#allocation2 + $0x8] sm:$0xff] %vm18_vm0, %v110_v16 }
  0xab   :  { %125 = vst.msk [vmem:[%s244_s3] sm:$0xff] %vm18_vm0, %v123_v18 }
  0xb0   :  { %v118_v19 = vld [vmem:[#allocation2 + $0x8] sm:$0xff] }
  0xb1   :  { %v124_v20 = vadd.f32 %v177_v14, %v118_v19 }
  0xb3   :  { %126 = vst.msk [vmem:[%s244_s3 + $0x8] sm:$0xff] %vm18_vm0, %v124_v20 }

// kernel: transformer_forward.49
= control target key start
LH: loop header
LB: loop body
LE: loop exit
PB: predicated region body
PF: predicated region fallthrough
CT: control target
= control target key end

     0   :  { %vm20_vm0 = vcmask 261120   ;;  %v175_v1 = vmov 0.0   ;;  %s226_s0 = inlined_call_operand.vmem [shape: bf16[16,64], index: 0, kind: input, shape index: {}]   ;;  %s227_s1 = inlined_call_operand.vmem [shape: bf16[64,32], index: 1, kind: input, shape index: {}]   ;;  %s228_s2 = inlined_call_operand.vmem [shape: f32[1,32], index: 2, kind: input, shape index: {}]   ;;  %s229_s3 = inlined_call_operand.hbm [shape: f32[16,32], index: 3, kind: output, shape index: {}]  }
   0x1   :  { %v143_v0 = vld [vmem:[%s227_s1 + $0x18] sm:$0xff]  ;;  %21 = vst.msk [vmem:[#allocation2] sm:$0xff] %vm20_vm0, %v175_v1 }
   0x2   :  { %8 = vsyncpa [#allocation4], 0  ;;  %72 = vmatpush.bf16.msra.mxu0 %v143_v0  ;;  %v142_v2 = vld [vmem:[%s227_s1 + $0x10] sm:$0xff]  ;;  %22 = vst.msk [vmem:[#allocation2 + $0x8] sm:$0xff] %vm20_vm0, %v175_v1  ;;  %v141_v3 = vld [vmem:[%s227_s1 + $0x8] sm:$0xff]  ;;  %vm64_vm1 = vcmask 523264  }
   0x3   :  { %v140_v4 = vld [vmem:[%s227_s1] sm:$0xff]  ;;  %s106_s26 = sshll.u32 %s229_s3, 4  ;;  %s178_s27 = smov 8   ;;  %s107_s26 = int_to_ptr.hbm [resolvable:$true] %s106_s26 }
   0x4   :  { %v139_v5 = vld [vmem:[%s226_s0] sm:$0xff]  ;;  %s176_s0 = smov [#allocation3]  }
   0x5   :  { %v148_v10 = vld [vmem:[%s228_s2] ss:$0 sm:$0xff]  ;;  %s104_s1 = sshll.u32 %s176_s0, 4  ;;  %s177_s2 = smov 128   ;;  %s105_s1 = int_to_ptr.vmem [resolvable:$true] %s104_s1 }
   0x6   :  { %73 = vmatpush.bf16.msra.mxu0 %v142_v2 }
   0x8   :  { %v23_v6 = vld [vmem:[#allocation2] sm:$0xff] }
   0x9   :  { %v24_v9 = vld [vmem:[#allocation2 + $0x8] sm:$0xff] }
   0xa   :  { %74 = vmatpush.bf16.msra.mxu0 %v141_v3 }
   0xe   :  { %75 = vmatpush.bf16.msra.mxu0 %v140_v4 }
  0x11   :  { %138 = vmatmul.msk.bf16.vlgmr.msra.gmra.mxu0 %vm64_vm1, %v139_v5 }
  0x8e   :  { %v77_v7 = vpop.f32.mrf.mxu0 }
  0x8f   :  { %v82_v8 = vadd.f32 %v77_v7, %v23_v6 }
  0x91   :  { %85 = vst.msk [vmem:[#allocation2] sm:$0xff] %vm20_vm0, %v82_v8 }
  0x96   :  { %v79_v11 = vpop.f32.mrf.mxu0 }
  0x97   :  { %v83_v12 = vadd.f32 %v79_v11, %v24_v9 }
  0x98   :  { %v90_v13 = vld [vmem:[#allocation2] sm:$0xff] }
  0x99   :  { %86 = vst.msk [vmem:[#allocation2 + $0x8] sm:$0xff] %vm20_vm0, %v83_v12  ;;  %v96_v14 = vadd.f32 %v148_v10, %v90_v13 }
  0x9b   :  { %98 = vst.msk [vmem:[#allocation3] sm:$0xff] %vm20_vm0, %v96_v14 }
  0xa0   :  { %v91_v15 = vld [vmem:[#allocation2 + $0x8] sm:$0xff] }
  0xa1   :  { %v97_v16 = vadd.f32 %v148_v10, %v91_v15 }
  0xa3   :  { %99 = vst.msk [vmem:[#allocation3 + $0x8] sm:$0xff] %vm20_vm0, %v97_v16 }
  0xa4   :  { %112 = dma.vmem_to_hbm [thread:$0]  %s105_s1, 256, %s107_s26, [#allocation4], %s177_s2, %s177_s2, %s178_s27  }
  0xa5   :  { %173 = dma.done.wait [#allocation4], 256  }
  0xa6   :  { %174 = vsyncadd [#allocation4], 4294967040 }
  0xa7   :  { %117 = vsyncpa [#allocation4], 1 }

</bundles_post_ra>
